<compile_context>
chip_gen: v5e
topology: v5e:2x2
jax: 0.10.0
libtpu: 0.0.40
codegen_flags: <defaults>
</compile_context>

<pallas_src>
import functools
import inspect

import jax
import jax.numpy as jnp
from jax.experimental import pallas as pl
from jax.experimental.pallas import tpu as pltpu


_SQRT_HALF = 0.7071067811865476

try:
    _HAS_PIPELINE_MODE = (
        "pipeline_mode" in inspect.signature(pl.BlockSpec).parameters
        and hasattr(pl, "Buffered"))
except (TypeError, ValueError):  # pragma: no cover - very old Pallas
    _HAS_PIPELINE_MODE = False


def _erf_approx(z):
    """Abramowitz & Stegun 7.1.26 erf approximation, |error| <= 1.5e-7.

    Uses exp (EUP slot) plus a short VPU polynomial, so it lowers inside Mosaic
    without a lax.erf rule and keeps exact-erf GELU semantics to well below the
    test tolerance.
    """
    p = 0.3275911
    a1, a2, a3, a4, a5 = (0.254829592, -0.284496736, 1.421413741,
                          -1.453152027, 1.061405429)
    za = jnp.abs(z)
    t = 1.0 / (1.0 + p * za)
    poly = ((((a5 * t + a4) * t + a3) * t + a2) * t + a1) * t
    erf_abs = 1.0 - poly * jnp.exp(-(za * za))
    return jnp.where(z < 0, -erf_abs, erf_abs)


def _gelu(x, approximate):
    if approximate:
        # tanh form: fully EUP-resident, small deviation from PyTorch exact erf.
        return jax.nn.gelu(x, approximate=True)
    return 0.5 * x * (1.0 + _erf_approx(x * _SQRT_HALF))


def resblock_kernel(x_ref, w1t_ref, b1t_ref, w2t_ref, b2t_ref,
                    wc1t_ref, bc1_ref, wc2t_ref, bc2_ref, o_ref,
                    *, gelu_approximate):
    bt, c, s = x_ref.shape
    cdt = w1t_ref.dtype                          # matmul-operand dtype

    x_cs = x_ref[...]                            # (bt, c, s), input dtype
    x_flat = x_cs.reshape(bt * c, s)             # free: merge leading dims

    # ---- temporal mixing in (bt*c, s): Linear(S->D), GELU, Linear(D->S) -----
    h = jnp.dot(x_flat.astype(cdt), w1t_ref[...],
                preferred_element_type=jnp.float32)                 # (bt*c, D)
    h = _gelu(h + b1t_ref[...], gelu_approximate)                   # bias (1, D)
    t = jnp.dot(h.astype(cdt), w2t_ref[...],
                preferred_element_type=jnp.float32) + b2t_ref[...]  # (bt*c, s)
    # Residual in the ORIGINAL input precision (f32 accumulator).
    x1_cs = x_flat.astype(jnp.float32) + t                          # (bt*c, s)

    # ---- single in-kernel XLU transpose into channel orientation ------------
    x1_sc = jnp.swapaxes(x1_cs.reshape(bt, c, s), 1, 2)             # (bt, s, c)
    x1_sc = x1_sc.reshape(bt * s, c)                                # free

    # ---- channel mixing in (bt*s, c): Linear(C->D), GELU, Linear(D->C) ------
    h2 = jnp.dot(x1_sc.astype(cdt), wc1t_ref[...],
                 preferred_element_type=jnp.float32)                # (bt*s, D)
    h2 = _gelu(h2 + bc1_ref[...], gelu_approximate)                 # bias (1, D)
    ch = jnp.dot(h2.astype(cdt), wc2t_ref[...],
                 preferred_element_type=jnp.float32) + bc2_ref[...]  # (bt*s, c)

    out = x1_sc + ch                                                # residual, f32
    o_ref[...] = out.reshape(bt, s, c).astype(o_ref.dtype)


def _vmem_capacity_bytes():
    """Physical VMEM per TensorCore (128 MiB v5e/v6e, 64 MiB v7x)."""
    try:
        cap = int(pltpu.get_tpu_info().vmem_capacity_bytes)
        if cap > 0:
            return cap
    except Exception:
        pass
    return 128 * 1024 * 1024


def _round_up(v, m):
    return -(-v // m) * m


def _pick_bt(B, S, C, D, in_isz, out_isz, budget_bytes):
    """Largest batch tile that divides B, keeps grid >= 2, and fits the budget."""

    def per_step_bytes(bt):
        # x / out tiles are double-buffered by the pipeline; sizes account for
        # (8, 128) VMEM padding of the minor dims.  Intermediates are f32.
        x_tile = bt * _round_up(C, 8) * _round_up(S, 128) * in_isz
        o_tile = bt * _round_up(S, 8) * _round_up(C, 128) * out_isz
        temps = 4 * bt * (
            _round_up(C, 8) * (_round_up(D, 128) + 2 * _round_up(S, 128))
            + _round_up(S, 8) * (_round_up(D, 128) + 3 * _round_up(C, 128)))
        return 2 * (x_tile + o_tile) + temps

    cap = B // 2 if B >= 2 else 1          # grid >= 2 so v7x can use both TCs
    best = 1
    for cand in range(1, max(cap, 1) + 1):
        if B % cand == 0 and per_step_bytes(cand) <= budget_bytes:
            best = cand
    return best


def resblock_forward(x, params, *, compute_dtype=None, bt=None,
                     gelu_approximate=False, single_buffer_weights=True):
    """x: (B, S, C) -> (B, S, C).  Dropout is inference-mode (identity).

    compute_dtype controls the MATMUL operand dtype only (jnp.bfloat16 is the
    recommended production path on v6e/v7x); accumulation, GELU and both
    residual adds stay f32, and x is streamed in its original dtype.
    """
    B, S, C = x.shape
    D = params["wt1"].shape[0]
    out_dtype = x.dtype
    cdt = jnp.dtype(compute_dtype) if compute_dtype is not None else jnp.dtype(x.dtype)

    # Single wrapper-side layout change: (B, S, C) -> (B, C, S), so the kernel
    # needs only one in-kernel transpose (after the temporal residual).
    x_cs = jnp.swapaxes(x, 1, 2)

    # Weights pre-transposed for plain (M,K)@(K,N); biases lane-dense (1,K) f32.
    w1t = params["wt1"].T.astype(cdt)                       # (S, D)
    b1t = params["bt1"].reshape(1, D).astype(jnp.float32)
    w2t = params["wt2"].T.astype(cdt)                       # (D, S)
    b2t = params["bt2"].reshape(1, S).astype(jnp.float32)
    wc1t = params["wc1"].T.astype(cdt)                      # (C, D)
    bc1 = params["bc1"].reshape(1, D).astype(jnp.float32)
    wc2t = params["wc2"].T.astype(cdt)                      # (D, C)
    bc2 = params["bc2"].reshape(1, C).astype(jnp.float32)

    in_isz = jnp.dtype(x.dtype).itemsize
    out_isz = jnp.dtype(out_dtype).itemsize
    w_isz = jnp.dtype(cdt).itemsize

    # Generation-aware VMEM budget: ~3/4 of physical VMEM (96 MiB on v5e/v6e's
    # 128 MiB, 48 MiB on v7x's 64 MiB), leaving headroom for compiler scratch.
    vmem_cap = _vmem_capacity_bytes()
    vmem_limit = int(max(min((3 * vmem_cap) // 4, vmem_cap - (8 << 20)), 32 << 20))

    n_weight_bufs = 1 if (single_buffer_weights and _HAS_PIPELINE_MODE) else 2
    weight_bytes = n_weight_bufs * (
        2 * (S * D + C * D) * w_isz
        + (2 * _round_up(D, 128) + _round_up(S, 128) + _round_up(C, 128)) * 8 * 4)
    if bt is None:
        budget = max(vmem_limit // 2 - weight_bytes, 2 << 20)
        bt = _pick_bt(B, S, C, D, in_isz, out_isz, budget)
    assert B % bt == 0, "batch tile must divide batch"

    cost = pl.CostEstimate(
        flops=8 * B * S * C * D,
        transcendentals=B * D * (S + C),
        bytes_accessed=(B * S * C * (in_isz + out_isz)
                        + 2 * (S * D + C * D) * w_isz + (2 * D + S + C) * 4))

    kernel = functools.partial(resblock_kernel, gelu_approximate=gelu_approximate)

    def const_spec(shape, single_buffer):
        index_map = lambda b: (0,) * len(shape)
        if single_buffer:
            # Fetched once, reused on every grid step; one buffer halves the
            # resident weight footprint (matters most on v7x's 64 MiB VMEM).
            return pl.BlockSpec(shape, index_map,
                                pipeline_mode=pl.Buffered(buffer_count=1))
        return pl.BlockSpec(shape, index_map)

    def build(single_buffer):
        in_specs = [pl.BlockSpec((bt, C, S), lambda b: (b, 0, 0))]   # x (B,C,S)
        for shp in ((S, D), (1, D), (D, S), (1, S),
                    (C, D), (1, D), (D, C), (1, C)):
            in_specs.append(const_spec(shp, single_buffer))
        return pl.pallas_call(
            kernel,
            out_shape=jax.ShapeDtypeStruct((B, S, C), out_dtype),
            grid=(B // bt,),
            in_specs=in_specs,
            out_specs=pl.BlockSpec((bt, S, C), lambda b: (b, 0, 0)),
            compiler_params=pltpu.CompilerParams(
                dimension_semantics=("parallel",),
                vmem_limit_bytes=vmem_limit),
            cost_estimate=cost)

    operands = (x_cs, w1t, b1t, w2t, b2t, wc1t, bc1, wc2t, bc2)
    if single_buffer_weights and _HAS_PIPELINE_MODE:
        try:
            return build(True)(*operands)
        except Exception:
            pass  # pipeline_mode present but rejected -> default double buffering
    return build(False)(*operands)


def resblock_reference(x, params):
    """Pure-JAX reference matching the PyTorch forward (dropout = identity)."""
    with jax.default_matmul_precision("highest"):
        xt = jnp.swapaxes(x, 1, 2)                                    # (B, C, S)
        h = jax.nn.gelu(xt @ params["wt1"].T + params["bt1"], approximate=False)
        t = h @ params["wt2"].T + params["bt2"]                       # (B, C, S)
        x1 = x + jnp.swapaxes(t, 1, 2)                                # (B, S, C)
        h2 = jax.nn.gelu(x1 @ params["wc1"].T + params["bc1"], approximate=False)
        ch = h2 @ params["wc2"].T + params["bc2"]                     # (B, S, C)
        return x1 + ch


if __name__ == "__main__":
    B, S, C, D = 4, 16, 8, 64   # batch, seq_len, num_channels, d_model

    key = jax.random.PRNGKey(0)
    ks = jax.random.split(key, 9)
    params = {
        "wt1": 0.1 * jax.random.normal(ks[0], (D, S), jnp.float32),
        "bt1": 0.1 * jax.random.normal(ks[1], (D,), jnp.float32),
        "wt2": 0.1 * jax.random.normal(ks[2], (S, D), jnp.float32),
        "bt2": 0.1 * jax.random.normal(ks[3], (S,), jnp.float32),
        "wc1": 0.1 * jax.random.normal(ks[4], (D, C), jnp.float32),
        "bc1": 0.1 * jax.random.normal(ks[5], (D,), jnp.float32),
        "wc2": 0.1 * jax.random.normal(ks[6], (C, D), jnp.float32),
        "bc2": 0.1 * jax.random.normal(ks[7], (C,), jnp.float32),
    }
    x = jax.random.normal(ks[8], (B, S, C), jnp.float32)

    ref = resblock_reference(x, params)

    # f32 operand path (MXU multi-pass f32 vs XLA highest-precision reference).
    out_f32 = jax.block_until_ready(resblock_forward(x, params))
    assert out_f32.shape == (B, S, C) and out_f32.dtype == x.dtype
    assert jnp.allclose(out_f32, ref, atol=1e-3, rtol=1e-3), "f32 mismatch vs reference"

    # bf16 matmul operands, f32 accumulation + f32 residual stream
    # (recommended production path on v6e/v7x).
    out_bf16 = jax.block_until_ready(
        resblock_forward(x, params, compute_dtype=jnp.bfloat16))
    assert out_bf16.dtype == x.dtype
    assert jnp.allclose(out_bf16, ref, atol=5e-2, rtol=5e-2), "bf16 mismatch vs reference"

    print("KERNEL_OK")
</pallas_src>

<mosaic_0001>
module attributes {stable_mosaic.version = 11 : i64} {
  func.func @resblock_kernel(%arg0: i32, %arg1: memref<2x8x16xf32, #tpu.memory_space<vmem>>, %arg2: memref<16x64xf32, #tpu.memory_space<vmem>>, %arg3: memref<1x64xf32, #tpu.memory_space<vmem>>, %arg4: memref<64x16xf32, #tpu.memory_space<vmem>>, %arg5: memref<1x16xf32, #tpu.memory_space<vmem>>, %arg6: memref<8x64xf32, #tpu.memory_space<vmem>>, %arg7: memref<1x64xf32, #tpu.memory_space<vmem>>, %arg8: memref<64x8xf32, #tpu.memory_space<vmem>>, %arg9: memref<1x8xf32, #tpu.memory_space<vmem>>, %arg10: memref<2x16x8xf32, #tpu.memory_space<vmem>>) attributes {dimension_semantics = [#tpu.dimension_semantics<parallel>], iteration_bounds = array<i64: 2>, scalar_prefetch = 0 : i64, scratch_operands = 0 : i64, tpu.core_type = #tpu.core_type<tc>, window_params = [{transform_indices = @transform_0, window_bounds = array<i64: 2, 8, 16>}, {pipeline_mode = #tpu.pipeline_mode<synchronous>, transform_indices = @transform_1, window_bounds = array<i64: 16, 64>}, {pipeline_mode = #tpu.pipeline_mode<synchronous>, transform_indices = @transform_2, window_bounds = array<i64: 1, 64>}, {pipeline_mode = #tpu.pipeline_mode<synchronous>, transform_indices = @transform_3, window_bounds = array<i64: 64, 16>}, {pipeline_mode = #tpu.pipeline_mode<synchronous>, transform_indices = @transform_4, window_bounds = array<i64: 1, 16>}, {pipeline_mode = #tpu.pipeline_mode<synchronous>, transform_indices = @transform_5, window_bounds = array<i64: 8, 64>}, {pipeline_mode = #tpu.pipeline_mode<synchronous>, transform_indices = @transform_6, window_bounds = array<i64: 1, 64>}, {pipeline_mode = #tpu.pipeline_mode<synchronous>, transform_indices = @transform_7, window_bounds = array<i64: 64, 8>}, {pipeline_mode = #tpu.pipeline_mode<synchronous>, transform_indices = @transform_8, window_bounds = array<i64: 1, 8>}, {transform_indices = @transform_9, window_bounds = array<i64: 2, 16, 8>}]} {
    %c0 = arith.constant 0 : index
    %c0_0 = arith.constant 0 : index
    %c0_1 = arith.constant 0 : index
    %0 = vector.load %arg1[%c0, %c0_0, %c0_1] : memref<2x8x16xf32, #tpu.memory_space<vmem>>, vector<2x8x16xf32>
    %1 = vector.shape_cast %0 : vector<2x8x16xf32> to vector<16x16xf32>
    %c0_2 = arith.constant 0 : index
    %c0_3 = arith.constant 0 : index
    %2 = vector.load %arg2[%c0_2, %c0_3] : memref<16x64xf32, #tpu.memory_space<vmem>>, vector<16x64xf32>
    %cst = arith.constant dense<0.000000e+00> : vector<16x64xf32>
    %3 = tpu.matmul %1, %2, %cst {dimension_numbers = #tpu.dot_dimension_numbers<[1], [0], [0], [1], [0, 0, 1, 1], [], []>} : vector<16x16xf32>, vector<16x64xf32>, vector<16x64xf32> -> vector<16x64xf32>
    %c0_4 = arith.constant 0 : index
    %c0_5 = arith.constant 0 : index
    %4 = vector.load %arg3[%c0_4, %c0_5] : memref<1x64xf32, #tpu.memory_space<vmem>>, vector<1x64xf32>
    %5 = vector.broadcast %4 : vector<1x64xf32> to vector<16x64xf32>
    %6 = arith.addf %3, %5 : vector<16x64xf32>
    %cst_6 = arith.constant 5.000000e-01 : f32
    %7 = vector.broadcast %cst_6 : f32 to vector<16x64xf32>
    %8 = arith.mulf %7, %6 : vector<16x64xf32>
    %cst_7 = arith.constant 0.707106769 : f32
    %9 = vector.broadcast %cst_7 : f32 to vector<16x64xf32>
    %10 = arith.mulf %6, %9 : vector<16x64xf32>
    %11 = math.absf %10 : vector<16x64xf32>
    %cst_8 = arith.constant 0.327591091 : f32
    %12 = vector.broadcast %cst_8 : f32 to vector<16x64xf32>
    %13 = arith.mulf %12, %11 : vector<16x64xf32>
    %cst_9 = arith.constant 1.000000e+00 : f32
    %14 = vector.broadcast %cst_9 : f32 to vector<16x64xf32>
    %15 = arith.addf %14, %13 : vector<16x64xf32>
    %cst_10 = arith.constant 1.000000e+00 : f32
    %16 = vector.broadcast %cst_10 : f32 to vector<16x64xf32>
    %17 = arith.divf %16, %15 : vector<16x64xf32>
    %cst_11 = arith.constant 1.06140542 : f32
    %18 = vector.broadcast %cst_11 : f32 to vector<16x64xf32>
    %19 = arith.mulf %18, %17 : vector<16x64xf32>
    %cst_12 = arith.constant -1.45315206 : f32
    %20 = vector.broadcast %cst_12 : f32 to vector<16x64xf32>
    %21 = arith.addf %19, %20 : vector<16x64xf32>
    %22 = arith.mulf %21, %17 : vector<16x64xf32>
    %cst_13 = arith.constant 1.42141378 : f32
    %23 = vector.broadcast %cst_13 : f32 to vector<16x64xf32>
    %24 = arith.addf %22, %23 : vector<16x64xf32>
    %25 = arith.mulf %24, %17 : vector<16x64xf32>
    %cst_14 = arith.constant -0.284496725 : f32
    %26 = vector.broadcast %cst_14 : f32 to vector<16x64xf32>
    %27 = arith.addf %25, %26 : vector<16x64xf32>
    %28 = arith.mulf %27, %17 : vector<16x64xf32>
    %cst_15 = arith.constant 0.254829586 : f32
    %29 = vector.broadcast %cst_15 : f32 to vector<16x64xf32>
    %30 = arith.addf %28, %29 : vector<16x64xf32>
    %31 = arith.mulf %30, %17 : vector<16x64xf32>
    %32 = arith.mulf %11, %11 : vector<16x64xf32>
    %cst_16 = arith.constant 0.000000e+00 : f32
    %33 = vector.broadcast %cst_16 : f32 to vector<16x64xf32>
    %34 = arith.subf %33, %32 : vector<16x64xf32>
    %35 = math.exp %34 : vector<16x64xf32>
    %36 = arith.mulf %31, %35 : vector<16x64xf32>
    %cst_17 = arith.constant 1.000000e+00 : f32
    %37 = vector.broadcast %cst_17 : f32 to vector<16x64xf32>
    %38 = arith.subf %37, %36 : vector<16x64xf32>
    %cst_18 = arith.constant 0.000000e+00 : f32
    %39 = vector.broadcast %cst_18 : f32 to vector<16x64xf32>
    %40 = arith.cmpf olt, %10, %39 : vector<16x64xf32>
    %cst_19 = arith.constant 0.000000e+00 : f32
    %41 = vector.broadcast %cst_19 : f32 to vector<16x64xf32>
    %42 = arith.subf %41, %38 : vector<16x64xf32>
    %43 = arith.select %40, %42, %38 : vector<16x64xi1>, vector<16x64xf32>
    %cst_20 = arith.constant 1.000000e+00 : f32
    %44 = vector.broadcast %cst_20 : f32 to vector<16x64xf32>
    %45 = arith.addf %44, %43 : vector<16x64xf32>
    %46 = arith.mulf %8, %45 : vector<16x64xf32>
    %c0_21 = arith.constant 0 : index
    %c0_22 = arith.constant 0 : index
    %47 = vector.load %arg4[%c0_21, %c0_22] : memref<64x16xf32, #tpu.memory_space<vmem>>, vector<64x16xf32>
    %cst_23 = arith.constant dense<0.000000e+00> : vector<16x16xf32>
    %48 = tpu.matmul %46, %47, %cst_23 {dimension_numbers = #tpu.dot_dimension_numbers<[1], [0], [0], [1], [0, 0, 1, 1], [], []>} : vector<16x64xf32>, vector<64x16xf32>, vector<16x16xf32> -> vector<16x16xf32>
    %c0_24 = arith.constant 0 : index
    %c0_25 = arith.constant 0 : index
    %49 = vector.load %arg5[%c0_24, %c0_25] : memref<1x16xf32, #tpu.memory_space<vmem>>, vector<1x16xf32>
    %50 = vector.broadcast %49 : vector<1x16xf32> to vector<16x16xf32>
    %51 = arith.addf %48, %50 : vector<16x16xf32>
    %52 = arith.addf %1, %51 : vector<16x16xf32>
    %53 = vector.shape_cast %52 : vector<16x16xf32> to vector<2x8x16xf32>
    %54 = tpu.transpose %53, [0, 2, 1] : vector<2x8x16xf32> -> vector<2x16x8xf32>
    %55 = vector.shape_cast %54 : vector<2x16x8xf32> to vector<32x8xf32>
    %c0_26 = arith.constant 0 : index
    %c0_27 = arith.constant 0 : index
    %56 = vector.load %arg6[%c0_26, %c0_27] : memref<8x64xf32, #tpu.memory_space<vmem>>, vector<8x64xf32>
    %cst_28 = arith.constant dense<0.000000e+00> : vector<32x64xf32>
    %57 = tpu.matmul %55, %56, %cst_28 {dimension_numbers = #tpu.dot_dimension_numbers<[1], [0], [0], [1], [0, 0, 1, 1], [], []>} : vector<32x8xf32>, vector<8x64xf32>, vector<32x64xf32> -> vector<32x64xf32>
    %c0_29 = arith.constant 0 : index
    %c0_30 = arith.constant 0 : index
    %58 = vector.load %arg7[%c0_29, %c0_30] : memref<1x64xf32, #tpu.memory_space<vmem>>, vector<1x64xf32>
    %59 = vector.broadcast %58 : vector<1x64xf32> to vector<32x64xf32>
    %60 = arith.addf %57, %59 : vector<32x64xf32>
    %cst_31 = arith.constant 5.000000e-01 : f32
    %61 = vector.broadcast %cst_31 : f32 to vector<32x64xf32>
    %62 = arith.mulf %61, %60 : vector<32x64xf32>
    %cst_32 = arith.constant 0.707106769 : f32
    %63 = vector.broadcast %cst_32 : f32 to vector<32x64xf32>
    %64 = arith.mulf %60, %63 : vector<32x64xf32>
    %65 = math.absf %64 : vector<32x64xf32>
    %cst_33 = arith.constant 0.327591091 : f32
    %66 = vector.broadcast %cst_33 : f32 to vector<32x64xf32>
    %67 = arith.mulf %66, %65 : vector<32x64xf32>
    %cst_34 = arith.constant 1.000000e+00 : f32
    %68 = vector.broadcast %cst_34 : f32 to vector<32x64xf32>
    %69 = arith.addf %68, %67 : vector<32x64xf32>
    %cst_35 = arith.constant 1.000000e+00 : f32
    %70 = vector.broadcast %cst_35 : f32 to vector<32x64xf32>
    %71 = arith.divf %70, %69 : vector<32x64xf32>
    %cst_36 = arith.constant 1.06140542 : f32
    %72 = vector.broadcast %cst_36 : f32 to vector<32x64xf32>
    %73 = arith.mulf %72, %71 : vector<32x64xf32>
    %cst_37 = arith.constant -1.45315206 : f32
    %74 = vector.broadcast %cst_37 : f32 to vector<32x64xf32>
    %75 = arith.addf %73, %74 : vector<32x64xf32>
    %76 = arith.mulf %75, %71 : vector<32x64xf32>
    %cst_38 = arith.constant 1.42141378 : f32
    %77 = vector.broadcast %cst_38 : f32 to vector<32x64xf32>
    %78 = arith.addf %76, %77 : vector<32x64xf32>
    %79 = arith.mulf %78, %71 : vector<32x64xf32>
    %cst_39 = arith.constant -0.284496725 : f32
    %80 = vector.broadcast %cst_39 : f32 to vector<32x64xf32>
    %81 = arith.addf %79, %80 : vector<32x64xf32>
    %82 = arith.mulf %81, %71 : vector<32x64xf32>
    %cst_40 = arith.constant 0.254829586 : f32
    %83 = vector.broadcast %cst_40 : f32 to vector<32x64xf32>
    %84 = arith.addf %82, %83 : vector<32x64xf32>
    %85 = arith.mulf %84, %71 : vector<32x64xf32>
    %86 = arith.mulf %65, %65 : vector<32x64xf32>
    %cst_41 = arith.constant 0.000000e+00 : f32
    %87 = vector.broadcast %cst_41 : f32 to vector<32x64xf32>
    %88 = arith.subf %87, %86 : vector<32x64xf32>
    %89 = math.exp %88 : vector<32x64xf32>
    %90 = arith.mulf %85, %89 : vector<32x64xf32>
    %cst_42 = arith.constant 1.000000e+00 : f32
    %91 = vector.broadcast %cst_42 : f32 to vector<32x64xf32>
    %92 = arith.subf %91, %90 : vector<32x64xf32>
    %cst_43 = arith.constant 0.000000e+00 : f32
    %93 = vector.broadcast %cst_43 : f32 to vector<32x64xf32>
    %94 = arith.cmpf olt, %64, %93 : vector<32x64xf32>
    %cst_44 = arith.constant 0.000000e+00 : f32
    %95 = vector.broadcast %cst_44 : f32 to vector<32x64xf32>
    %96 = arith.subf %95, %92 : vector<32x64xf32>
    %97 = arith.select %94, %96, %92 : vector<32x64xi1>, vector<32x64xf32>
    %cst_45 = arith.constant 1.000000e+00 : f32
    %98 = vector.broadcast %cst_45 : f32 to vector<32x64xf32>
    %99 = arith.addf %98, %97 : vector<32x64xf32>
    %100 = arith.mulf %62, %99 : vector<32x64xf32>
    %c0_46 = arith.constant 0 : index
    %c0_47 = arith.constant 0 : index
    %101 = vector.load %arg8[%c0_46, %c0_47] : memref<64x8xf32, #tpu.memory_space<vmem>>, vector<64x8xf32>
    %cst_48 = arith.constant dense<0.000000e+00> : vector<32x8xf32>
    %102 = tpu.matmul %100, %101, %cst_48 {dimension_numbers = #tpu.dot_dimension_numbers<[1], [0], [0], [1], [0, 0, 1, 1], [], []>} : vector<32x64xf32>, vector<64x8xf32>, vector<32x8xf32> -> vector<32x8xf32>
    %c0_49 = arith.constant 0 : index
    %c0_50 = arith.constant 0 : index
    %103 = vector.load %arg9[%c0_49, %c0_50] : memref<1x8xf32, #tpu.memory_space<vmem>>, vector<1x8xf32>
    %104 = vector.broadcast %103 : vector<1x8xf32> to vector<32x8xf32>
    %105 = arith.addf %102, %104 : vector<32x8xf32>
    %106 = arith.addf %55, %105 : vector<32x8xf32>
    %107 = vector.shape_cast %106 : vector<32x8xf32> to vector<2x16x8xf32>
    %c0_51 = arith.constant 0 : index
    %c0_52 = arith.constant 0 : index
    %c0_53 = arith.constant 0 : index
    %108 = vector.load %arg10[%c0_51, %c0_52, %c0_53] : memref<2x16x8xf32, #tpu.memory_space<vmem>>, vector<2x16x8xf32>
    tpu.vector_store %arg10[%c0_51, %c0_52, %c0_53], %107 {strides = array<i32>} : memref<2x16x8xf32, #tpu.memory_space<vmem>>, vector<2x16x8xf32>,
    return
  }
  func.func @transform_0(%arg0: i32) -> (i32, i32, i32) {
    %c0_i32 = arith.constant 0 : i32
    %c0_i32_0 = arith.constant 0 : i32
    %c0_i32_1 = arith.constant 0 : i32
    return %arg0, %c0_i32, %c0_i32_0 : i32, i32, i32
  }
  func.func @transform_1(%arg0: i32) -> (i32, i32) {
    %c0_i32 = arith.constant 0 : i32
    %c0_i32_0 = arith.constant 0 : i32
    %c0_i32_1 = arith.constant 0 : i32
    return %c0_i32, %c0_i32_0 : i32, i32
  }
  func.func @transform_2(%arg0: i32) -> (i32, i32) {
    %c0_i32 = arith.constant 0 : i32
    %c0_i32_0 = arith.constant 0 : i32
    %c0_i32_1 = arith.constant 0 : i32
    return %c0_i32, %c0_i32_0 : i32, i32
  }
  func.func @transform_3(%arg0: i32) -> (i32, i32) {
    %c0_i32 = arith.constant 0 : i32
    %c0_i32_0 = arith.constant 0 : i32
    %c0_i32_1 = arith.constant 0 : i32
    return %c0_i32, %c0_i32_0 : i32, i32
  }
  func.func @transform_4(%arg0: i32) -> (i32, i32) {
    %c0_i32 = arith.constant 0 : i32
    %c0_i32_0 = arith.constant 0 : i32
    %c0_i32_1 = arith.constant 0 : i32
    return %c0_i32, %c0_i32_0 : i32, i32
  }
  func.func @transform_5(%arg0: i32) -> (i32, i32) {
    %c0_i32 = arith.constant 0 : i32
    %c0_i32_0 = arith.constant 0 : i32
    %c0_i32_1 = arith.constant 0 : i32
    return %c0_i32, %c0_i32_0 : i32, i32
  }
  func.func @transform_6(%arg0: i32) -> (i32, i32) {
    %c0_i32 = arith.constant 0 : i32
    %c0_i32_0 = arith.constant 0 : i32
    %c0_i32_1 = arith.constant 0 : i32
    return %c0_i32, %c0_i32_0 : i32, i32
  }
  func.func @transform_7(%arg0: i32) -> (i32, i32) {
    %c0_i32 = arith.constant 0 : i32
    %c0_i32_0 = arith.constant 0 : i32
    %c0_i32_1 = arith.constant 0 : i32
    return %c0_i32, %c0_i32_0 : i32, i32
  }
  func.func @transform_8(%arg0: i32) -> (i32, i32) {
    %c0_i32 = arith.constant 0 : i32
    %c0_i32_0 = arith.constant 0 : i32
    %c0_i32_1 = arith.constant 0 : i32
    return %c0_i32, %c0_i32_0 : i32, i32
  }
  func.func @transform_9(%arg0: i32) -> (i32, i32, i32) {
    %c0_i32 = arith.constant 0 : i32
    %c0_i32_0 = arith.constant 0 : i32
    %c0_i32_1 = arith.constant 0 : i32
    return %arg0, %c0_i32, %c0_i32_0 : i32, i32, i32
  }
}

module attributes {stable_mosaic.version = 11 : i64} {
  func.func @resblock_kernel(%arg0: i32, %arg1: memref<2x8x16xf32, #tpu.memory_space<vmem>>, %arg2: memref<16x64xf32, #tpu.memory_space<vmem>>, %arg3: memref<1x64xf32, #tpu.memory_space<vmem>>, %arg4: memref<64x16xf32, #tpu.memory_space<vmem>>, %arg5: memref<1x16xf32, #tpu.memory_space<vmem>>, %arg6: memref<8x64xf32, #tpu.memory_space<vmem>>, %arg7: memref<1x64xf32, #tpu.memory_space<vmem>>, %arg8: memref<64x8xf32, #tpu.memory_space<vmem>>, %arg9: memref<1x8xf32, #tpu.memory_space<vmem>>, %arg10: memref<2x16x8xf32, #tpu.memory_space<vmem>>) attributes {dimension_semantics = [#tpu.dimension_semantics<parallel>], iteration_bounds = array<i64: 2>, scalar_prefetch = 0 : i64, scratch_operands = 0 : i64, tpu.core_type = #tpu.core_type<tc>, window_params = [{transform_indices = @transform_0, window_bounds = array<i64: 2, 8, 16>}, {pipeline_mode = #tpu.pipeline_mode<synchronous>, transform_indices = @transform_1, window_bounds = array<i64: 16, 64>}, {pipeline_mode = #tpu.pipeline_mode<synchronous>, transform_indices = @transform_2, window_bounds = array<i64: 1, 64>}, {pipeline_mode = #tpu.pipeline_mode<synchronous>, transform_indices = @transform_3, window_bounds = array<i64: 64, 16>}, {pipeline_mode = #tpu.pipeline_mode<synchronous>, transform_indices = @transform_4, window_bounds = array<i64: 1, 16>}, {pipeline_mode = #tpu.pipeline_mode<synchronous>, transform_indices = @transform_5, window_bounds = array<i64: 8, 64>}, {pipeline_mode = #tpu.pipeline_mode<synchronous>, transform_indices = @transform_6, window_bounds = array<i64: 1, 64>}, {pipeline_mode = #tpu.pipeline_mode<synchronous>, transform_indices = @transform_7, window_bounds = array<i64: 64, 8>}, {pipeline_mode = #tpu.pipeline_mode<synchronous>, transform_indices = @transform_8, window_bounds = array<i64: 1, 8>}, {transform_indices = @transform_9, window_bounds = array<i64: 2, 16, 8>}]} {
    %c0 = arith.constant 0 : index
    %c0_0 = arith.constant 0 : index
    %c0_1 = arith.constant 0 : index
    %0 = vector.load %arg1[%c0, %c0_0, %c0_1] : memref<2x8x16xf32, #tpu.memory_space<vmem>>, vector<2x8x16xf32>
    %1 = vector.shape_cast %0 : vector<2x8x16xf32> to vector<16x16xf32>
    %c0_2 = arith.constant 0 : index
    %c0_3 = arith.constant 0 : index
    %2 = vector.load %arg2[%c0_2, %c0_3] : memref<16x64xf32, #tpu.memory_space<vmem>>, vector<16x64xf32>
    %cst = arith.constant dense<0.000000e+00> : vector<16x64xf32>
    %3 = tpu.matmul %1, %2, %cst {dimension_numbers = #tpu.dot_dimension_numbers<[1], [0], [0], [1], [0, 0, 1, 1], [], []>} : vector<16x16xf32>, vector<16x64xf32>, vector<16x64xf32> -> vector<16x64xf32>
    %c0_4 = arith.constant 0 : index
    %c0_5 = arith.constant 0 : index
    %4 = vector.load %arg3[%c0_4, %c0_5] : memref<1x64xf32, #tpu.memory_space<vmem>>, vector<1x64xf32>
    %5 = vector.broadcast %4 : vector<1x64xf32> to vector<16x64xf32>
    %6 = arith.addf %3, %5 : vector<16x64xf32>
    %cst_6 = arith.constant 5.000000e-01 : f32
    %7 = vector.broadcast %cst_6 : f32 to vector<16x64xf32>
    %8 = arith.mulf %7, %6 : vector<16x64xf32>
    %cst_7 = arith.constant 0.707106769 : f32
    %9 = vector.broadcast %cst_7 : f32 to vector<16x64xf32>
    %10 = arith.mulf %6, %9 : vector<16x64xf32>
    %11 = math.absf %10 : vector<16x64xf32>
    %cst_8 = arith.constant 0.327591091 : f32
    %12 = vector.broadcast %cst_8 : f32 to vector<16x64xf32>
    %13 = arith.mulf %12, %11 : vector<16x64xf32>
    %cst_9 = arith.constant 1.000000e+00 : f32
    %14 = vector.broadcast %cst_9 : f32 to vector<16x64xf32>
    %15 = arith.addf %14, %13 : vector<16x64xf32>
    %cst_10 = arith.constant 1.000000e+00 : f32
    %16 = vector.broadcast %cst_10 : f32 to vector<16x64xf32>
    %17 = arith.divf %16, %15 : vector<16x64xf32>
    %cst_11 = arith.constant 1.06140542 : f32
    %18 = vector.broadcast %cst_11 : f32 to vector<16x64xf32>
    %19 = arith.mulf %18, %17 : vector<16x64xf32>
    %cst_12 = arith.constant -1.45315206 : f32
    %20 = vector.broadcast %cst_12 : f32 to vector<16x64xf32>
    %21 = arith.addf %19, %20 : vector<16x64xf32>
    %22 = arith.mulf %21, %17 : vector<16x64xf32>
    %cst_13 = arith.constant 1.42141378 : f32
    %23 = vector.broadcast %cst_13 : f32 to vector<16x64xf32>
    %24 = arith.addf %22, %23 : vector<16x64xf32>
    %25 = arith.mulf %24, %17 : vector<16x64xf32>
    %cst_14 = arith.constant -0.284496725 : f32
    %26 = vector.broadcast %cst_14 : f32 to vector<16x64xf32>
    %27 = arith.addf %25, %26 : vector<16x64xf32>
    %28 = arith.mulf %27, %17 : vector<16x64xf32>
    %cst_15 = arith.constant 0.254829586 : f32
    %29 = vector.broadcast %cst_15 : f32 to vector<16x64xf32>
    %30 = arith.addf %28, %29 : vector<16x64xf32>
    %31 = arith.mulf %30, %17 : vector<16x64xf32>
    %32 = arith.mulf %11, %11 : vector<16x64xf32>
    %cst_16 = arith.constant 0.000000e+00 : f32
    %33 = vector.broadcast %cst_16 : f32 to vector<16x64xf32>
    %34 = arith.subf %33, %32 : vector<16x64xf32>
    %35 = math.exp %34 : vector<16x64xf32>
    %36 = arith.mulf %31, %35 : vector<16x64xf32>
    %cst_17 = arith.constant 1.000000e+00 : f32
    %37 = vector.broadcast %cst_17 : f32 to vector<16x64xf32>
    %38 = arith.subf %37, %36 : vector<16x64xf32>
    %cst_18 = arith.constant 0.000000e+00 : f32
    %39 = vector.broadcast %cst_18 : f32 to vector<16x64xf32>
    %40 = arith.cmpf olt, %10, %39 : vector<16x64xf32>
    %cst_19 = arith.constant 0.000000e+00 : f32
    %41 = vector.broadcast %cst_19 : f32 to vector<16x64xf32>
    %42 = arith.subf %41, %38 : vector<16x64xf32>
    %43 = arith.select %40, %42, %38 : vector<16x64xi1>, vector<16x64xf32>
    %cst_20 = arith.constant 1.000000e+00 : f32
    %44 = vector.broadcast %cst_20 : f32 to vector<16x64xf32>
    %45 = arith.addf %44, %43 : vector<16x64xf32>
    %46 = arith.mulf %8, %45 : vector<16x64xf32>
    %c0_21 = arith.constant 0 : index
    %c0_22 = arith.constant 0 : index
    %47 = vector.load %arg4[%c0_21, %c0_22] : memref<64x16xf32, #tpu.memory_space<vmem>>, vector<64x16xf32>
    %cst_23 = arith.constant dense<0.000000e+00> : vector<16x16xf32>
    %48 = tpu.matmul %46, %47, %cst_23 {dimension_numbers = #tpu.dot_dimension_numbers<[1], [0], [0], [1], [0, 0, 1, 1], [], []>} : vector<16x64xf32>, vector<64x16xf32>, vector<16x16xf32> -> vector<16x16xf32>
    %c0_24 = arith.constant 0 : index
    %c0_25 = arith.constant 0 : index
    %49 = vector.load %arg5[%c0_24, %c0_25] : memref<1x16xf32, #tpu.memory_space<vmem>>, vector<1x16xf32>
    %50 = vector.broadcast %49 : vector<1x16xf32> to vector<16x16xf32>
    %51 = arith.addf %48, %50 : vector<16x16xf32>
    %52 = arith.addf %1, %51 : vector<16x16xf32>
    %53 = vector.shape_cast %52 : vector<16x16xf32> to vector<2x8x16xf32>
    %54 = tpu.transpose %53, [0, 2, 1] : vector<2x8x16xf32> -> vector<2x16x8xf32>
    %55 = vector.shape_cast %54 : vector<2x16x8xf32> to vector<32x8xf32>
    %c0_26 = arith.constant 0 : index
    %c0_27 = arith.constant 0 : index
    %56 = vector.load %arg6[%c0_26, %c0_27] : memref<8x64xf32, #tpu.memory_space<vmem>>, vector<8x64xf32>
    %cst_28 = arith.constant dense<0.000000e+00> : vector<32x64xf32>
    %57 = tpu.matmul %55, %56, %cst_28 {dimension_numbers = #tpu.dot_dimension_numbers<[1], [0], [0], [1], [0, 0, 1, 1], [], []>} : vector<32x8xf32>, vector<8x64xf32>, vector<32x64xf32> -> vector<32x64xf32>
    %c0_29 = arith.constant 0 : index
    %c0_30 = arith.constant 0 : index
    %58 = vector.load %arg7[%c0_29, %c0_30] : memref<1x64xf32, #tpu.memory_space<vmem>>, vector<1x64xf32>
    %59 = vector.broadcast %58 : vector<1x64xf32> to vector<32x64xf32>
    %60 = arith.addf %57, %59 : vector<32x64xf32>
    %cst_31 = arith.constant 5.000000e-01 : f32
    %61 = vector.broadcast %cst_31 : f32 to vector<32x64xf32>
    %62 = arith.mulf %61, %60 : vector<32x64xf32>
    %cst_32 = arith.constant 0.707106769 : f32
    %63 = vector.broadcast %cst_32 : f32 to vector<32x64xf32>
    %64 = arith.mulf %60, %63 : vector<32x64xf32>
    %65 = math.absf %64 : vector<32x64xf32>
    %cst_33 = arith.constant 0.327591091 : f32
    %66 = vector.broadcast %cst_33 : f32 to vector<32x64xf32>
    %67 = arith.mulf %66, %65 : vector<32x64xf32>
    %cst_34 = arith.constant 1.000000e+00 : f32
    %68 = vector.broadcast %cst_34 : f32 to vector<32x64xf32>
    %69 = arith.addf %68, %67 : vector<32x64xf32>
    %cst_35 = arith.constant 1.000000e+00 : f32
    %70 = vector.broadcast %cst_35 : f32 to vector<32x64xf32>
    %71 = arith.divf %70, %69 : vector<32x64xf32>
    %cst_36 = arith.constant 1.06140542 : f32
    %72 = vector.broadcast %cst_36 : f32 to vector<32x64xf32>
    %73 = arith.mulf %72, %71 : vector<32x64xf32>
    %cst_37 = arith.constant -1.45315206 : f32
    %74 = vector.broadcast %cst_37 : f32 to vector<32x64xf32>
    %75 = arith.addf %73, %74 : vector<32x64xf32>
    %76 = arith.mulf %75, %71 : vector<32x64xf32>
    %cst_38 = arith.constant 1.42141378 : f32
    %77 = vector.broadcast %cst_38 : f32 to vector<32x64xf32>
    %78 = arith.addf %76, %77 : vector<32x64xf32>
    %79 = arith.mulf %78, %71 : vector<32x64xf32>
    %cst_39 = arith.constant -0.284496725 : f32
    %80 = vector.broadcast %cst_39 : f32 to vector<32x64xf32>
    %81 = arith.addf %79, %80 : vector<32x64xf32>
    %82 = arith.mulf %81, %71 : vector<32x64xf32>
    %cst_40 = arith.constant 0.254829586 : f32
    %83 = vector.broadcast %cst_40 : f32 to vector<32x64xf32>
    %84 = arith.addf %82, %83 : vector<32x64xf32>
    %85 = arith.mulf %84, %71 : vector<32x64xf32>
    %86 = arith.mulf %65, %65 : vector<32x64xf32>
    %cst_41 = arith.constant 0.000000e+00 : f32
    %87 = vector.broadcast %cst_41 : f32 to vector<32x64xf32>
    %88 = arith.subf %87, %86 : vector<32x64xf32>
    %89 = math.exp %88 : vector<32x64xf32>
    %90 = arith.mulf %85, %89 : vector<32x64xf32>
    %cst_42 = arith.constant 1.000000e+00 : f32
    %91 = vector.broadcast %cst_42 : f32 to vector<32x64xf32>
    %92 = arith.subf %91, %90 : vector<32x64xf32>
    %cst_43 = arith.constant 0.000000e+00 : f32
    %93 = vector.broadcast %cst_43 : f32 to vector<32x64xf32>
    %94 = arith.cmpf olt, %64, %93 : vector<32x64xf32>
    %cst_44 = arith.constant 0.000000e+00 : f32
    %95 = vector.broadcast %cst_44 : f32 to vector<32x64xf32>
    %96 = arith.subf %95, %92 : vector<32x64xf32>
    %97 = arith.select %94, %96, %92 : vector<32x64xi1>, vector<32x64xf32>
    %cst_45 = arith.constant 1.000000e+00 : f32
    %98 = vector.broadcast %cst_45 : f32 to vector<32x64xf32>
    %99 = arith.addf %98, %97 : vector<32x64xf32>
    %100 = arith.mulf %62, %99 : vector<32x64xf32>
    %c0_46 = arith.constant 0 : index
    %c0_47 = arith.constant 0 : index
    %101 = vector.load %arg8[%c0_46, %c0_47] : memref<64x8xf32, #tpu.memory_space<vmem>>, vector<64x8xf32>
    %cst_48 = arith.constant dense<0.000000e+00> : vector<32x8xf32>
    %102 = tpu.matmul %100, %101, %cst_48 {dimension_numbers = #tpu.dot_dimension_numbers<[1], [0], [0], [1], [0, 0, 1, 1], [], []>} : vector<32x64xf32>, vector<64x8xf32>, vector<32x8xf32> -> vector<32x8xf32>
    %c0_49 = arith.constant 0 : index
    %c0_50 = arith.constant 0 : index
    %103 = vector.load %arg9[%c0_49, %c0_50] : memref<1x8xf32, #tpu.memory_space<vmem>>, vector<1x8xf32>
    %104 = vector.broadcast %103 : vector<1x8xf32> to vector<32x8xf32>
    %105 = arith.addf %102, %104 : vector<32x8xf32>
    %106 = arith.addf %55, %105 : vector<32x8xf32>
    %107 = vector.shape_cast %106 : vector<32x8xf32> to vector<2x16x8xf32>
    %c0_51 = arith.constant 0 : index
    %c0_52 = arith.constant 0 : index
    %c0_53 = arith.constant 0 : index
    %108 = vector.load %arg10[%c0_51, %c0_52, %c0_53] : memref<2x16x8xf32, #tpu.memory_space<vmem>>, vector<2x16x8xf32>
    tpu.vector_store %arg10[%c0_51, %c0_52, %c0_53], %107 {strides = array<i32>} : memref<2x16x8xf32, #tpu.memory_space<vmem>>, vector<2x16x8xf32>,
    return
  }
  func.func @transform_0(%arg0: i32) -> (i32, i32, i32) {
    %c0_i32 = arith.constant 0 : i32
    %c0_i32_0 = arith.constant 0 : i32
    %c0_i32_1 = arith.constant 0 : i32
    return %arg0, %c0_i32, %c0_i32_0 : i32, i32, i32
  }
  func.func @transform_1(%arg0: i32) -> (i32, i32) {
    %c0_i32 = arith.constant 0 : i32
    %c0_i32_0 = arith.constant 0 : i32
    %c0_i32_1 = arith.constant 0 : i32
    return %c0_i32, %c0_i32_0 : i32, i32
  }
  func.func @transform_2(%arg0: i32) -> (i32, i32) {
    %c0_i32 = arith.constant 0 : i32
    %c0_i32_0 = arith.constant 0 : i32
    %c0_i32_1 = arith.constant 0 : i32
    return %c0_i32, %c0_i32_0 : i32, i32
  }
  func.func @transform_3(%arg0: i32) -> (i32, i32) {
    %c0_i32 = arith.constant 0 : i32
    %c0_i32_0 = arith.constant 0 : i32
    %c0_i32_1 = arith.constant 0 : i32
    return %c0_i32, %c0_i32_0 : i32, i32
  }
  func.func @transform_4(%arg0: i32) -> (i32, i32) {
    %c0_i32 = arith.constant 0 : i32
    %c0_i32_0 = arith.constant 0 : i32
    %c0_i32_1 = arith.constant 0 : i32
    return %c0_i32, %c0_i32_0 : i32, i32
  }
  func.func @transform_5(%arg0: i32) -> (i32, i32) {
    %c0_i32 = arith.constant 0 : i32
    %c0_i32_0 = arith.constant 0 : i32
    %c0_i32_1 = arith.constant 0 : i32
    return %c0_i32, %c0_i32_0 : i32, i32
  }
  func.func @transform_6(%arg0: i32) -> (i32, i32) {
    %c0_i32 = arith.constant 0 : i32
    %c0_i32_0 = arith.constant 0 : i32
    %c0_i32_1 = arith.constant 0 : i32
    return %c0_i32, %c0_i32_0 : i32, i32
  }
  func.func @transform_7(%arg0: i32) -> (i32, i32) {
    %c0_i32 = arith.constant 0 : i32
    %c0_i32_0 = arith.constant 0 : i32
    %c0_i32_1 = arith.constant 0 : i32
    return %c0_i32, %c0_i32_0 : i32, i32
  }
  func.func @transform_8(%arg0: i32) -> (i32, i32) {
    %c0_i32 = arith.constant 0 : i32
    %c0_i32_0 = arith.constant 0 : i32
    %c0_i32_1 = arith.constant 0 : i32
    return %c0_i32, %c0_i32_0 : i32, i32
  }
  func.func @transform_9(%arg0: i32) -> (i32, i32, i32) {
    %c0_i32 = arith.constant 0 : i32
    %c0_i32_0 = arith.constant 0 : i32
    %c0_i32_1 = arith.constant 0 : i32
    return %arg0, %c0_i32, %c0_i32_0 : i32, i32, i32
  }
}

</mosaic_0001>

<bundles_post_ra>
// kernel: tpu_custom_call.1
= control target key start
LH: loop header
LB: loop body
LE: loop exit
PB: predicated region body
PF: predicated region fallthrough
CT: control target
= control target key end

     0   :  { %s1018_s30 = smov 0   ;;  %s1209_s0 = inlined_call_operand.vmem [shape: f32[4,8,16], index: 0, kind: input, shape index: {}]   ;;  %s1210_s1 = inlined_call_operand.vmem [shape: f32[16,64], index: 1, kind: input, shape index: {}]   ;;  %s1211_s2 = inlined_call_operand.vmem [shape: f32[1,64], index: 2, kind: input, shape index: {}]   ;;  %s1212_s3 = inlined_call_operand.vmem [shape: f32[64,16], index: 3, kind: input, shape index: {}]   ;;  %s1213_s4 = inlined_call_operand.vmem [shape: f32[1,16], index: 4, kind: input, shape index: {}]   ;;  %s1214_s5 = inlined_call_operand.vmem [shape: f32[8,64], index: 5, kind: input, shape index: {}]   ;;  %s1215_s6 = inlined_call_operand.vmem [shape: f32[1,64], index: 6, kind: input, shape index: {}]   ;;  %s1216_s7 = inlined_call_operand.vmem [shape: f32[64,8], index: 7, kind: input, shape index: {}]   ;;  %s1217_s8 = inlined_call_operand.vmem [shape: f32[1,8], index: 8, kind: input, shape index: {}]   ;;  %s1218_s9 = inlined_call_operand.vmem [shape: f32[4,16,8], index: 9, kind: output, shape index: {}]  }
   0x1 LB: > { %s890_s10 = sadd.s32 4294967295, %s966_s30   ;;  %p894_p0 = scmp.ge.s32.totalorder %s966_s30, 1  ;;  %s966_s30 = sphi %s1018_s30, %s19_s30  }
   0x2   : > { %p288_p1 = scmp.lt.s32.totalorder %s966_s30, 3 }
   0x4   : > { %p289_p2 = pnand %p894_p0, %p288_p1 }
   0x5   : > { %s895_s15 = sshll.u32 (!%p289_p2), %s890_s10, 1 }
   0x6   : > { %292 = sbr.rel (%p289_p2) target bundleno = 841 (0x349), region = 56  ;;  %p326_p3 = scmp.lt.s32.totalorder (!%p289_p2), %s895_s15, 3 }
   0xb   : > { %v341_v0 = vld [vmem:[%s1210_s1 + $0x8] sm:$0xff]  ;;  %v340_v1 = vld [vmem:[%s1210_s1] sm:$0xff]  ;;  %s1220_s15 = smov (!%p326_p3, %s895_s15), 3  ;;  %vm346_vm0 = vcmask 130048   ;;  %v463_v7 = vld [vmem:[%s1212_s3 + $0x38] sm:$0xff]  ;;  %vm468_vm10 = vcmask 523264  }
   0xc   : > { %367 = vmatpush.msra.mxu0 %v341_v0  ;;  %s896_s16 = sshll.u32 %s1220_s15, 3  ;;  %v932_v4 = vld [vmem:[%s1211_s2] ss:$0 sm:$0xff]  ;;  %v462_v8 = vld [vmem:[%s1212_s3 + $0x30] sm:$0xff]  ;;  %483 = vmatpush.msra.mxu1 %v463_v7  ;;  %v461_v10 = vld [vmem:[%s1212_s3 + $0x28] sm:$0xff]  ;;  %vm569_vm12 = vcmask 64512  }
   0xd   : > { %s329_s19 = scalar_lea.vmem %s1209_s0, %s896_s16  ;;  %v460_v12 = vld [vmem:[%s1212_s3 + $0x20] sm:$0xff]  ;;  %v459_v14 = vld [vmem:[%s1212_s3 + $0x18] sm:$0xff]  ;;  %v458_v18 = vld [vmem:[%s1212_s3 + $0x10] sm:$0xff]  ;;  %s914_s24 = sshll.u32 %s1220_s15, 4 }
   0xe   : > { %368 = vmatpush.msra.mxu0 %v340_v1  ;;  %v1038_v2 = vld [vmem:[%s329_s19] sm:$0xff]  ;;  %v1041_v3 = vld [vmem:[%s329_s19 + $0x8] sm:$0xff]  ;;  %484 = vmatpush.msra.mxu1 %v462_v8  ;;  %s336_s27 = scalar_lea.vmem %s1218_s9, %s914_s24 }
   0xf   : > { %900 = vmatmul.msk.f32.vlgmr.msra.gmra.mxu0 %vm346_vm0, %v1038_v2  ;;  %v457_v19 = vld [vmem:[%s1212_s3 + $0x8] sm:$0xff]  ;;  %v456_v21 = vld [vmem:[%s1212_s3] sm:$0xff] }
  0x10   : > { %485 = vmatpush.msra.mxu1 %v461_v10 }
  0x12   : > { %486 = vmatpush.msra.mxu1 %v460_v12 }
  0x14   : > { %487 = vmatpush.msra.mxu1 %v459_v14 }
  0x16   : > { %488 = vmatpush.msra.mxu1 %v458_v18 }
  0x17   : > { %901 = vmatmul.msk.f32.gmra.mxu0 %vm346_vm0, %v1041_v3 }
  0x18   : > { %489 = vmatpush.msra.mxu1 %v457_v19 }
  0x1a   : > { %490 = vmatpush.msra.mxu1 %v456_v21 }
  0x8c   : > { %v370_v5 = vpop.f32.mrf.mxu0 }
  0x8d   : > { %v1047_v6 = vadd.f32 %v932_v4, %v370_v5 }
  0x8f   : > { %v1056_v9 = vmul.f32 0.70710677, %v1047_v6 }
  0x91   : > { %v380_v11 = vand.u32 2147483647, %v1056_v9  ;;  %vm446_vm9 = vcmp.lt.f32.partialorder %v1056_v9, 0.0 }
  0x93   : > { %v382_v13 = vmul.f32 0.3275911, %v380_v11  ;;  %v434_v34 = vmul.f32 %v380_v11, %v380_v11 }
  0x94   : > { %v373_v15 = vpop.f32.mrf.mxu0 }
  0x95   : > { %v384_v16 = vadd.f32 1.0, %v382_v13  ;;  %v1068_v17 = vadd.f32 %v932_v4, %v373_v15  ;;  %v436_v40 = vsub.f32 0.0, %v434_v34  ;;  %v376_v13 = vmul.f32 0.5, %v1047_v6  ;;  %v564_v6 = vld [vmem:[%s1214_s5] sm:$0xff] }
  0x96   : > { %597 = vmatpush.msra.mxu2 %v564_v6 }
  0x97   : > { %936 = vrcp.f32 %v384_v16  ;;  %v1077_v20 = vmul.f32 0.70710677, %v1068_v17  ;;  %v397_v28 = vand.u32 2147483648, %v384_v16  ;;  %v395_v30 = vand.u32 2147483647, %v384_v16 }
  0x98   : > { %vm391_vm2 = vweird.f32 %v384_v16  ;;  %v438_v49 = vmul.f32 1.442695, %v436_v40 }
  0x99   : > { %v381_v22 = vand.u32 2147483647, %v1077_v20  ;;  %v398_v32 = vor.u32 1.1754944e-38, %v397_v28  ;;  %vm396_vm4 = vcmp.eq.f32.partialorder %v395_v30, 8.507059e+37  ;;  %vm447_vm11 = vcmp.lt.f32.partialorder %v1077_v20, 0.0 }
  0x9b   : > { %v383_v23 = vmul.f32 0.3275911, %v381_v22  ;;  %v435_v51 = vmul.f32 %v381_v22, %v381_v22 }
  0x9d   : > { %v937_v24 = vpop.eup %936  ;;  %v385_v26 = vadd.f32 1.0, %v383_v23  ;;  %v437_v57 = vsub.f32 0.0, %v435_v51 }
  0x9e   : > { %v387_v25 = vmul.f32 %v937_v24, %v384_v16  ;;  %vm392_vm1 = vweird.f32 %v937_v24 }
  0x9f   : > { %938 = vrcp.f32 %v385_v26  ;;  %vm393_vm3 = vmor %vm391_vm2, %vm392_vm1  ;;  %v412_v41 = vand.u32 2147483648, %v385_v26  ;;  %vm406_vm5 = vweird.f32 %v385_v26  ;;  %v410_v44 = vand.u32 2147483647, %v385_v26 }
  0xa0   : > { %v388_v27 = vsub.f32 1.0, %v387_v25  ;;  %940 = vpow2.f32 %v438_v49  ;;  %v440_v62 = vmul.f32 1.442695, %v437_v57 }
  0xa1   : > { %v413_v47 = vor.u32 1.1754944e-38, %v412_v41  ;;  %vm411_vm8 = vcmp.eq.f32.partialorder %v410_v44, 8.507059e+37 }
  0xa2   : > { %v389_v29 = vmul.f32 %v937_v24, %v388_v27  ;;  %942 = vpow2.f32 %v440_v62 }
  0xa4   : > { %v390_v31 = vadd.f32 %v937_v24, %v389_v29 }
  0xa5   : > { %v939_v33 = vpop.eup %938 }
  0xa6   : > { %v394_v35 = vsel %vm393_vm3, %v937_v24, %v390_v31  ;;  %v402_v36 = vmul.f32 %v939_v33, %v385_v26  ;;  %vm407_vm6 = vweird.f32 %v939_v33  ;;  %v941_v0 = vpop.eup %940  ;;  %v377_v24 = vmul.f32 0.5, %v1068_v17  ;;  %v933_v26 = vld [vmem:[%s1213_s4] ss:$0 sm:$0xff] }
  0xa7   : > { %v399_v37 = vsel %vm396_vm4, %v398_v32, %v394_v35  ;;  %vm408_vm7 = vmor %vm406_vm5, %vm407_vm6 }
  0xa8   : > { %v416_v38 = vmul.f32 1.0614054, %v399_v37  ;;  %v403_v39 = vsub.f32 1.0, %v402_v36  ;;  %v943_v16 = vpop.eup %942 }
  0xaa   : > { %v418_v42 = vadd.f32 -1.4531521, %v416_v38  ;;  %v404_v43 = vmul.f32 %v939_v33, %v403_v39 }
  0xac   : > { %v420_v45 = vmul.f32 %v418_v42, %v399_v37  ;;  %v405_v46 = vadd.f32 %v939_v33, %v404_v43  ;;  %v778_v43 = vld [vmem:[%s1216_s7 + $0x38] sm:$0xff] }
  0xad   : > { %803 = vmatpush.msrb.mxu0 %v778_v43  ;;  %915 = vmatpush.msra.mxu3 %v778_v43 }
  0xae   : > { %v422_v48 = vadd.f32 1.4214138, %v420_v45  ;;  %v409_v50 = vsel %vm408_vm7, %v939_v33, %v405_v46  ;;  %v777_v45 = vld [vmem:[%s1216_s7 + $0x30] sm:$0xff] }
  0xaf   : > { %v414_v53 = vsel %vm411_vm8, %v413_v47, %v409_v50  ;;  %804 = vmatpush.msrb.mxu0 %v777_v45  ;;  %916 = vmatpush.msra.mxu3 %v777_v45 }
  0xb0   : > { %v424_v52 = vmul.f32 %v422_v48, %v399_v37  ;;  %v417_v54 = vmul.f32 1.0614054, %v414_v53  ;;  %v776_v48 = vld [vmem:[%s1216_s7 + $0x28] sm:$0xff] }
  0xb1   : > { %805 = vmatpush.msrb.mxu0 %v776_v48  ;;  %917 = vmatpush.msra.mxu3 %v776_v48 }
  0xb2   : > { %v426_v55 = vadd.f32 -0.28449672, %v424_v52  ;;  %v419_v56 = vadd.f32 -1.4531521, %v417_v54 }
  0xb4   : > { %v428_v58 = vmul.f32 %v426_v55, %v399_v37  ;;  %v421_v59 = vmul.f32 %v419_v56, %v414_v53  ;;  %v774_v56 = vld [vmem:[%s1216_s7 + $0x18] sm:$0xff] }
  0xb6   : > { %v430_v60 = vadd.f32 0.2548296, %v428_v58  ;;  %v423_v61 = vadd.f32 1.4214138, %v421_v59 }
  0xb8   : > { %v432_v63 = vmul.f32 %v430_v60, %v399_v37  ;;  %v425_v1 = vmul.f32 %v423_v61, %v414_v53  ;;  %v773_v61 = vld [vmem:[%s1216_s7 + $0x10] sm:$0xff] }
  0xba   : > { %v442_v4 = vmul.f32 %v941_v0, %v432_v63  ;;  %v427_v5 = vadd.f32 -0.28449672, %v425_v1  ;;  %v772_v63 = vld [vmem:[%s1216_s7 + $0x8] sm:$0xff] }
  0xbc   : > { %v444_v7 = vsub.f32 1.0, %v442_v4  ;;  %v429_v8 = vmul.f32 %v427_v5, %v414_v53  ;;  %v771_v4 = vld [vmem:[%s1216_s7] sm:$0xff] }
  0xbe   : > { %v448_v10 = vsub.f32 0.0, %v444_v7  ;;  %v431_v11 = vadd.f32 0.2548296, %v429_v8 }
  0xc0   : > { %v450_v12 = vsel %vm446_vm9, %v448_v10, %v444_v7  ;;  %v433_v15 = vmul.f32 %v431_v11, %v414_v53  ;;  %v775_v53 = vld [vmem:[%s1216_s7 + $0x20] sm:$0xff] }
  0xc1   : > { %v452_v14 = vadd.f32 1.0, %v450_v12  ;;  %806 = vmatpush.msrb.mxu0 %v775_v53  ;;  %918 = vmatpush.msra.mxu3 %v775_v53 }
  0xc2   : > { %v443_v19 = vmul.f32 %v943_v16, %v433_v15 }
  0xc3   : > { %v454_v18 = vmul.f32 %v452_v14, %v376_v13  ;;  %807 = vmatpush.msrb.mxu0 %v774_v56  ;;  %919 = vmatpush.msra.mxu3 %v774_v56 }
  0xc4   : > { %v445_v21 = vsub.f32 1.0, %v443_v19 }
  0xc5   : > { %902 = vmatmul.msk.f32.vlgmr.msra.gmra.mxu1 %vm468_vm10, %v454_v18  ;;  %808 = vmatpush.msrb.mxu0 %v773_v61 }
  0xc6   : > { %v449_v22 = vsub.f32 0.0, %v445_v21  ;;  %920 = vmatpush.msra.mxu3 %v773_v61 }
  0xc7   : > { %809 = vmatpush.msrb.mxu0 %v772_v63 }
  0xc8   : > { %v451_v23 = vsel %vm447_vm11, %v449_v22, %v445_v21  ;;  %921 = vmatpush.msra.mxu3 %v772_v63 }
  0xc9   : > { %v453_v9 = vadd.f32 1.0, %v451_v23  ;;  %810 = vmatpush.msrb.mxu0 %v771_v4 }
  0xca   : > { %922 = vmatpush.msra.mxu3 %v771_v4 }
  0xcb   : > { %v455_v25 = vmul.f32 %v453_v9, %v377_v24 }
  0xcd   : > { %903 = vmatmul.msk.f32.gmra.mxu1 %vm468_vm10, %v455_v25 }
 0x142   : > { %v492_v27 = vpop.f32.mrf.mxu1 }
 0x143   : > { %v493_v28 = vadd.f32 %v933_v26, %v492_v27 }
 0x145   : > { %v498_v20 = vadd.f32 %v493_v28, %v1038_v2 }
 0x147   : > { %500 = vxpose.xlu0.b32.start.end [1/1] (short) (narrow) %v498_v20, 16 }
 0x14a   : > { %v495_v29 = vpop.f32.mrf.mxu1 }
 0x14b   : > { %v496_v17 = vadd.f32 %v933_v26, %v495_v29 }
 0x14d   : > { %v499_v30 = vadd.f32 %v496_v17, %v1041_v3  ;;  %v934_v3 = vld [vmem:[%s1215_s6] ss:$0 sm:$0xff] }
 0x157   : > { %532 = vxpose.xlu0.b32.start.end [1/1] (short) (narrow) %v499_v30, 16 }
 0x1eb   : > { %v1097_v31 = vpop.trf.xlu0 }
 0x1ec   : > { %904 = vmatmul.msk.f32.vlgmr.msra.gmra.mxu2 %vm569_vm12, %v1097_v31 }
 0x1f3   : > { %v1101_v32 = vpop.trf.xlu0 }
 0x1f4   : > { %905 = vmatmul.msk.f32.gmra.mxu2 %vm569_vm12, %v1101_v32 }
 0x1fb   : > { %v1105_v33 = vpop.trf.xlu0 }
 0x1fc   : > { %906 = vmatmul.msk.f32.gmra.mxu2 %vm569_vm12, %v1105_v33 }
 0x203   : > { %v1109_v2 = vpop.trf.xlu0 }
 0x204   : > { %907 = vmatmul.msk.f32.gmra.mxu2 %vm569_vm12, %v1109_v2 }
 0x26f   : > { %v599_v34 = vpop.f32.mrf.mxu2 }
 0x270   : > { %v1116_v35 = vadd.f32 %v934_v3, %v599_v34 }
 0x272   : > { %v1119_v36 = vmul.f32 0.70710677, %v1116_v35 }
 0x274   : > { %v619_v37 = vand.u32 2147483647, %v1119_v36 }
 0x276   : > { %v623_v38 = vmul.f32 0.3275911, %v619_v37  ;;  %v727_v12 = vmul.f32 %v619_v37, %v619_v37 }
 0x277   : > { %v602_v39 = vpop.f32.mrf.mxu2 }
 0x278   : > { %v627_v40 = vadd.f32 1.0, %v623_v38  ;;  %v1122_v41 = vadd.f32 %v934_v3, %v602_v39  ;;  %v731_v21 = vsub.f32 0.0, %v727_v12 }
 0x27a   : > { %944 = vrcp.f32 %v627_v40  ;;  %v1125_v42 = vmul.f32 0.70710677, %v1122_v41  ;;  %v642_v57 = vand.u32 2147483648, %v627_v40  ;;  %v640_v60 = vand.u32 2147483647, %v627_v40 }
 0x27b   : > { %vm636_vm14 = vweird.f32 %v627_v40  ;;  %v735_v17 = vmul.f32 1.442695, %v731_v21 }
 0x27c   : > { %v1131_v44 = vand.u32 2147483647, %v1125_v42  ;;  %v643_v5 = vor.u32 1.1754944e-38, %v642_v57  ;;  %vm641_vm0 = vcmp.eq.f32.partialorder %v640_v60, 8.507059e+37 }
 0x27e   : > { %v624_v46 = vmul.f32 0.3275911, %v1131_v44  ;;  %v728_v39 = vmul.f32 %v1131_v44, %v1131_v44 }
 0x27f   : > { %v605_v47 = vpop.f32.mrf.mxu2 }
 0x280   : > { %v945_v49 = vpop.eup %944  ;;  %v1140_v50 = vadd.f32 %v934_v3, %v605_v47  ;;  %v628_v52 = vadd.f32 1.0, %v624_v46 }
 0x281   : > { %v632_v51 = vmul.f32 %v945_v49, %v627_v40  ;;  %vm637_vm13 = vweird.f32 %v945_v49 }
 0x282   : > { %v1146_v54 = vmul.f32 0.70710677, %v1140_v50  ;;  %946 = vrcp.f32 %v628_v52  ;;  %vm638_vm15 = vmor %vm636_vm14, %vm637_vm13  ;;  %v657_v22 = vand.u32 2147483648, %v628_v52  ;;  %v655_v24 = vand.u32 2147483647, %v628_v52 }
 0x283   : > { %v633_v55 = vsub.f32 1.0, %v632_v51  ;;  %vm651_vm2 = vweird.f32 %v628_v52  ;;  %vm751_vm13 = vcmp.lt.f32.partialorder %v1119_v36, 0.0 }
 0x284   : > { %v1152_v58 = vand.u32 2147483647, %v1146_v54  ;;  %v658_v20 = vor.u32 1.1754944e-38, %v657_v22  ;;  %vm656_vm4 = vcmp.eq.f32.partialorder %v655_v24, 8.507059e+37 }
 0x285   : > { %v634_v59 = vmul.f32 %v945_v49, %v633_v55 }
 0x286   : > { %v625_v62 = vmul.f32 0.3275911, %v1152_v58 }
 0x287   : > { %v635_v0 = vadd.f32 %v945_v49, %v634_v59  ;;  %v608_v1 = vpop.f32.mrf.mxu2  ;;  %v729_v59 = vmul.f32 %v1152_v58, %v1152_v58  ;;  %v611_v58 = vmul.f32 0.5, %v1116_v35 }
 0x288   : > { %v629_v7 = vadd.f32 1.0, %v625_v62  ;;  %v1164_v8 = vadd.f32 %v934_v3, %v608_v1  ;;  %v947_v10 = vpop.eup %946 }
 0x289   : > { %v639_v11 = vsel %vm638_vm15, %v945_v49, %v635_v0  ;;  %v647_v14 = vmul.f32 %v947_v10, %v628_v52  ;;  %vm652_vm1 = vweird.f32 %v947_v10  ;;  %v732_v52 = vsub.f32 0.0, %v728_v39 }
 0x28a   : > { %v644_v13 = vsel %vm641_vm0, %v643_v5, %v639_v11  ;;  %948 = vrcp.f32 %v629_v7  ;;  %v1167_v18 = vmul.f32 0.70710677, %v1164_v8  ;;  %vm653_vm3 = vmor %vm651_vm2, %vm652_vm1  ;;  %v670_v40 = vand.u32 2147483647, %v629_v7 }
 0x28b   : > { %v691_v15 = vmul.f32 1.0614054, %v644_v13  ;;  %v648_v16 = vsub.f32 1.0, %v647_v14  ;;  %v672_v43 = vand.u32 2147483648, %v629_v7  ;;  %vm666_vm6 = vweird.f32 %v629_v7 }
 0x28c   : > { %v1170_v9 = vand.u32 2147483647, %v1167_v18  ;;  %vm671_vm8 = vcmp.eq.f32.partialorder %v670_v40, 8.507059e+37  ;;  %v737_v1 = vmul.f32 1.442695, %v732_v52  ;;  %v733_v11 = vsub.f32 0.0, %v729_v59 }
 0x28d   : > { %v695_v19 = vadd.f32 -1.4531521, %v691_v15  ;;  %v649_v23 = vmul.f32 %v947_v10, %v648_v16  ;;  %v673_v53 = vor.u32 1.1754944e-38, %v672_v43  ;;  %vm752_vm0 = vcmp.lt.f32.partialorder %v1125_v42, 0.0 }
 0x28e   : > { %v626_v27 = vmul.f32 0.3275911, %v1170_v9  ;;  %v730_v35 = vmul.f32 %v1170_v9, %v1170_v9  ;;  %vm753_vm1 = vcmp.lt.f32.partialorder %v1146_v54, 0.0  ;;  %vm754_vm2 = vcmp.lt.f32.partialorder %v1167_v18, 0.0 }
 0x28f   : > { %v699_v25 = vmul.f32 %v695_v19, %v644_v13  ;;  %v650_v26 = vadd.f32 %v947_v10, %v649_v23 }
 0x290   : > { %v949_v6 = vpop.eup %948  ;;  %v630_v30 = vadd.f32 1.0, %v626_v27 }
 0x291   : > { %v703_v28 = vadd.f32 1.4214138, %v699_v25  ;;  %v662_v29 = vmul.f32 %v949_v6, %v629_v7  ;;  %v654_v3 = vsel %vm653_vm3, %v947_v10, %v650_v26  ;;  %vm667_vm5 = vweird.f32 %v949_v6 }
 0x292   : > { %v659_v38 = vsel %vm656_vm4, %v658_v20, %v654_v3  ;;  %950 = vrcp.f32 %v630_v30  ;;  %vm668_vm7 = vmor %vm666_vm6, %vm667_vm5  ;;  %v685_v12 = vand.u32 2147483647, %v630_v30  ;;  %v687_v14 = vand.u32 2147483648, %v630_v30 }
 0x293   : > { %v707_v34 = vmul.f32 %v703_v28, %v644_v13  ;;  %v663_v37 = vsub.f32 1.0, %v662_v29  ;;  %v692_v47 = vmul.f32 1.0614054, %v659_v38  ;;  %952 = vpow2.f32 %v735_v17 }
 0x294   : > { %954 = vpow2.f32 %v737_v1  ;;  %vm681_vm11 = vweird.f32 %v630_v30  ;;  %v739_v25 = vmul.f32 1.442695, %v733_v11  ;;  %vm686_vm15 = vcmp.eq.f32.partialorder %v685_v12, 8.507059e+37 }
 0x295   : > { %v711_v45 = vadd.f32 -0.28449672, %v707_v34  ;;  %v664_v46 = vmul.f32 %v949_v6, %v663_v37  ;;  %v696_v51 = vadd.f32 -1.4531521, %v692_v47 }
 0x296   : > { %956 = vpow2.f32 %v739_v25 }
 0x297   : > { %v715_v48 = vmul.f32 %v711_v45, %v644_v13  ;;  %v665_v49 = vadd.f32 %v949_v6, %v664_v46  ;;  %v700_v56 = vmul.f32 %v696_v51, %v659_v38  ;;  %v734_v45 = vsub.f32 0.0, %v730_v35 }
 0x298   : > { %v951_v44 = vpop.eup %950 }
 0x299   : > { %v719_v55 = vadd.f32 0.2548296, %v715_v48  ;;  %v669_v57 = vsel %vm668_vm7, %v949_v6, %v665_v49  ;;  %v677_v62 = vmul.f32 %v951_v44, %v630_v30  ;;  %v704_v63 = vadd.f32 1.4214138, %v700_v56  ;;  %v953_v0 = vpop.eup %952 }
 0x29a   : > { %v674_v60 = vsel %vm671_vm8, %v673_v53, %v669_v57  ;;  %vm682_vm9 = vweird.f32 %v951_v44  ;;  %v688_v6 = vor.u32 1.1754944e-38, %v687_v14  ;;  %v955_v30 = vpop.eup %954  ;;  %v741_v9 = vmul.f32 1.442695, %v734_v45 }
 0x29b   : > { %v723_v61 = vmul.f32 %v719_v55, %v644_v13  ;;  %v693_v4 = vmul.f32 1.0614054, %v674_v60  ;;  %v678_v7 = vsub.f32 1.0, %v677_v62  ;;  %v708_v10 = vmul.f32 %v704_v63, %v659_v38  ;;  %vm683_vm14 = vmor %vm681_vm11, %vm682_vm9 }
 0x29c   : > { %v957_v53 = vpop.eup %956  ;;  %v612_v57 = vmul.f32 0.5, %v1122_v41  ;;  %958 = vpow2.f32 %v741_v9 }
 0x29d   : > { %v743_v5 = vmul.f32 %v953_v0, %v723_v61  ;;  %v697_v15 = vadd.f32 -1.4531521, %v693_v4  ;;  %v679_v19 = vmul.f32 %v951_v44, %v678_v7  ;;  %v712_v21 = vadd.f32 -0.28449672, %v708_v10 }
 0x29f   : > { %v747_v16 = vsub.f32 1.0, %v743_v5  ;;  %v701_v13 = vmul.f32 %v697_v15, %v674_v60  ;;  %v680_v23 = vadd.f32 %v951_v44, %v679_v19  ;;  %v716_v24 = vmul.f32 %v712_v21, %v659_v38 }
 0x2a1   : > { %v755_v22 = vsub.f32 0.0, %v747_v16  ;;  %v705_v26 = vadd.f32 1.4214138, %v701_v13  ;;  %v720_v28 = vadd.f32 0.2548296, %v716_v24  ;;  %v684_v20 = vsel %vm683_vm14, %v951_v44, %v680_v23 }
 0x2a2   : > { %v689_v3 = vsel %vm686_vm15, %v688_v6, %v684_v20  ;;  %v959_v41 = vpop.eup %958 }
 0x2a3   : > { %v759_v27 = vsel %vm751_vm13, %v755_v22, %v747_v16  ;;  %v709_v17 = vmul.f32 %v705_v26, %v674_v60  ;;  %v724_v34 = vmul.f32 %v720_v28, %v659_v38  ;;  %v694_v37 = vmul.f32 1.0614054, %v689_v3 }
 0x2a4   : > { %v763_v29 = vadd.f32 1.0, %v759_v27  ;;  %v614_v16 = vmul.f32 0.5, %v1164_v8 }
 0x2a5   : > { %v713_v40 = vadd.f32 -0.28449672, %v709_v17  ;;  %v744_v36 = vmul.f32 %v955_v30, %v724_v34  ;;  %v698_v43 = vadd.f32 -1.4531521, %v694_v37 }
 0x2a6   : > { %v767_v39 = vmul.f32 %v763_v29, %v611_v58 }
 0x2a7   : > { %v717_v46 = vmul.f32 %v713_v40, %v674_v60  ;;  %v748_v47 = vsub.f32 1.0, %v744_v36  ;;  %v702_v48 = vmul.f32 %v698_v43, %v689_v3 }
 0x2a8   : > { %908 = vmatmul.msk.f32.vlgmr.msrb.gmra.mxu0 %vm468_vm10, %v767_v39 }
 0x2a9   : > { %v721_v49 = vadd.f32 0.2548296, %v717_v46  ;;  %v756_v51 = vsub.f32 0.0, %v748_v47  ;;  %v706_v52 = vadd.f32 1.4214138, %v702_v48 }
 0x2ab   : > { %v725_v38 = vmul.f32 %v721_v49, %v674_v60  ;;  %v760_v55 = vsel %vm752_vm0, %v756_v51, %v748_v47  ;;  %v710_v56 = vmul.f32 %v706_v52, %v689_v3  ;;  %v613_v60 = vmul.f32 0.5, %v1140_v50  ;;  %v935_v50 = vld [vmem:[%s1217_s8] ss:$0 sm:$0xff] }
 0x2ac   : > { %v764_v44 = vadd.f32 1.0, %v760_v55 }
 0x2ad   : > { %v745_v59 = vmul.f32 %v957_v53, %v725_v38  ;;  %v714_v61 = vadd.f32 -0.28449672, %v710_v56 }
 0x2ae   : > { %v768_v62 = vmul.f32 %v764_v44, %v612_v57 }
 0x2af   : > { %v749_v63 = vsub.f32 1.0, %v745_v59  ;;  %v718_v0 = vmul.f32 %v714_v61, %v689_v3 }
 0x2b0   : > { %909 = vmatmul.msk.f32.vlgmr.msra.gmra.mxu3 %vm468_vm10, %v768_v62 }
 0x2b1   : > { %v757_v1 = vsub.f32 0.0, %v749_v63  ;;  %v722_v42 = vadd.f32 0.2548296, %v718_v0 }
 0x2b3   : > { %v761_v4 = vsel %vm753_vm1, %v757_v1, %v749_v63  ;;  %v726_v7 = vmul.f32 %v722_v42, %v689_v3 }
 0x2b4   : > { %v765_v5 = vadd.f32 1.0, %v761_v4 }
 0x2b5   : > { %v746_v11 = vmul.f32 %v959_v41, %v726_v7 }
 0x2b6   : > { %v769_v10 = vmul.f32 %v765_v5, %v613_v60 }
 0x2b7   : > { %v750_v12 = vsub.f32 1.0, %v746_v11 }
 0x2b8   : > { %910 = vmatmul.msk.f32.gmra.mxu3 %vm468_vm10, %v769_v10 }
 0x2b9   : > { %v758_v14 = vsub.f32 0.0, %v750_v12 }
 0x2bb   : > { %v762_v15 = vsel %vm754_vm2, %v758_v14, %v750_v12 }
 0x2bc   : > { %v766_v54 = vadd.f32 1.0, %v762_v15 }
 0x2be   : > { %v770_v19 = vmul.f32 %v766_v54, %v614_v16 }
 0x2c0   : > { %911 = vmatmul.msk.f32.gmra.mxu3 %vm468_vm10, %v770_v19 }
 0x325   : > { %v812_v21 = vpop.f32.mrf.mxu0 }
 0x326   : > { %v813_v58 = vadd.f32 %v935_v50, %v812_v21 }
 0x328   : > { %v824_v18 = vadd.f32 %v813_v58, %v1097_v31 }
 0x32a   : > { %828 = vst.msk [vmem:[%s336_s27] sm:$0xff] %vm569_vm12, %v824_v18 }
 0x333   : > { %v815_v8 = vpop.f32.mrf.mxu3 }
 0x334   : > { %v816_v13 = vadd.f32 %v935_v50, %v815_v8 }
 0x336   : > { %v825_v22 = vadd.f32 %v816_v13, %v1101_v32 }
 0x338   : > { %829 = vst.msk [vmem:[%s336_s27 + $0x8] sm:$0xff] %vm569_vm12, %v825_v22 }
 0x33b   : > { %v818_v23 = vpop.f32.mrf.mxu3 }
 0x33c   : > { %v819_v24 = vadd.f32 %v935_v50, %v818_v23 }
 0x33e   : > { %v826_v25 = vadd.f32 %v819_v24, %v1105_v33 }
 0x340   : > { %830 = vst.msk [vmem:[%s336_s27 + $0x10] sm:$0xff] %vm569_vm12, %v826_v25 }
 0x343   : > { %v821_v6 = vpop.f32.mrf.mxu3 }
 0x344   : > { %v822_v26 = vadd.f32 %v935_v50, %v821_v6 }
 0x346   : > { %v827_v27 = vadd.f32 %v822_v26, %v1109_v2 }
 0x348   : > { %831 = vst.msk [vmem:[%s336_s27 + $0x18] sm:$0xff] %vm569_vm12, %v827_v27 }
 0x349 PF: > { %s19_s30 = sadd.s32 1, %s966_s30  }
 0x34a   : > { %p16_p4 = scmp.ge.s32.totalorder %s19_s30, 4  }
 0x34c   :  { %18 = sbr.rel (!%p16_p4) target bundleno = 1 (0x1), region = 86 }

// kernel: tpu_custom_call.1
= control target key start
LH: loop header
LB: loop body
LE: loop exit
PB: predicated region body
PF: predicated region fallthrough
CT: control target
= control target key end

     0   :  { %s1018_s30 = smov 0   ;;  %s1209_s0 = inlined_call_operand.vmem [shape: f32[4,8,16], index: 0, kind: input, shape index: {}]   ;;  %s1210_s1 = inlined_call_operand.vmem [shape: f32[16,64], index: 1, kind: input, shape index: {}]   ;;  %s1211_s2 = inlined_call_operand.vmem [shape: f32[1,64], index: 2, kind: input, shape index: {}]   ;;  %s1212_s3 = inlined_call_operand.vmem [shape: f32[64,16], index: 3, kind: input, shape index: {}]   ;;  %s1213_s4 = inlined_call_operand.vmem [shape: f32[1,16], index: 4, kind: input, shape index: {}]   ;;  %s1214_s5 = inlined_call_operand.vmem [shape: f32[8,64], index: 5, kind: input, shape index: {}]   ;;  %s1215_s6 = inlined_call_operand.vmem [shape: f32[1,64], index: 6, kind: input, shape index: {}]   ;;  %s1216_s7 = inlined_call_operand.vmem [shape: f32[64,8], index: 7, kind: input, shape index: {}]   ;;  %s1217_s8 = inlined_call_operand.vmem [shape: f32[1,8], index: 8, kind: input, shape index: {}]   ;;  %s1218_s9 = inlined_call_operand.vmem [shape: f32[4,16,8], index: 9, kind: output, shape index: {}]  }
   0x1 LB: > { %s890_s10 = sadd.s32 4294967295, %s966_s30   ;;  %p894_p0 = scmp.ge.s32.totalorder %s966_s30, 1  ;;  %s966_s30 = sphi %s1018_s30, %s19_s30  }
   0x2   : > { %p288_p1 = scmp.lt.s32.totalorder %s966_s30, 3 }
   0x4   : > { %p289_p2 = pnand %p894_p0, %p288_p1 }
   0x5   : > { %s895_s15 = sshll.u32 (!%p289_p2), %s890_s10, 1 }
   0x6   : > { %292 = sbr.rel (%p289_p2) target bundleno = 841 (0x349), region = 56  ;;  %p326_p3 = scmp.lt.s32.totalorder (!%p289_p2), %s895_s15, 3 }
   0xb   : > { %v341_v0 = vld [vmem:[%s1210_s1 + $0x8] sm:$0xff]  ;;  %v340_v1 = vld [vmem:[%s1210_s1] sm:$0xff]  ;;  %s1220_s15 = smov (!%p326_p3, %s895_s15), 3  ;;  %vm346_vm0 = vcmask 130048   ;;  %v463_v7 = vld [vmem:[%s1212_s3 + $0x38] sm:$0xff]  ;;  %vm468_vm10 = vcmask 523264  }
   0xc   : > { %367 = vmatpush.msra.mxu0 %v341_v0  ;;  %s896_s16 = sshll.u32 %s1220_s15, 3  ;;  %v932_v4 = vld [vmem:[%s1211_s2] ss:$0 sm:$0xff]  ;;  %v462_v8 = vld [vmem:[%s1212_s3 + $0x30] sm:$0xff]  ;;  %483 = vmatpush.msra.mxu1 %v463_v7  ;;  %v461_v10 = vld [vmem:[%s1212_s3 + $0x28] sm:$0xff]  ;;  %vm569_vm12 = vcmask 64512  }
   0xd   : > { %s329_s19 = scalar_lea.vmem %s1209_s0, %s896_s16  ;;  %v460_v12 = vld [vmem:[%s1212_s3 + $0x20] sm:$0xff]  ;;  %v459_v14 = vld [vmem:[%s1212_s3 + $0x18] sm:$0xff]  ;;  %v458_v18 = vld [vmem:[%s1212_s3 + $0x10] sm:$0xff]  ;;  %s914_s24 = sshll.u32 %s1220_s15, 4 }
   0xe   : > { %368 = vmatpush.msra.mxu0 %v340_v1  ;;  %v1038_v2 = vld [vmem:[%s329_s19] sm:$0xff]  ;;  %v1041_v3 = vld [vmem:[%s329_s19 + $0x8] sm:$0xff]  ;;  %484 = vmatpush.msra.mxu1 %v462_v8  ;;  %s336_s27 = scalar_lea.vmem %s1218_s9, %s914_s24 }
   0xf   : > { %900 = vmatmul.msk.f32.vlgmr.msra.gmra.mxu0 %vm346_vm0, %v1038_v2  ;;  %v457_v19 = vld [vmem:[%s1212_s3 + $0x8] sm:$0xff]  ;;  %v456_v21 = vld [vmem:[%s1212_s3] sm:$0xff] }
  0x10   : > { %485 = vmatpush.msra.mxu1 %v461_v10 }
  0x12   : > { %486 = vmatpush.msra.mxu1 %v460_v12 }
  0x14   : > { %487 = vmatpush.msra.mxu1 %v459_v14 }
  0x16   : > { %488 = vmatpush.msra.mxu1 %v458_v18 }
  0x17   : > { %901 = vmatmul.msk.f32.gmra.mxu0 %vm346_vm0, %v1041_v3 }
  0x18   : > { %489 = vmatpush.msra.mxu1 %v457_v19 }
  0x1a   : > { %490 = vmatpush.msra.mxu1 %v456_v21 }
  0x8c   : > { %v370_v5 = vpop.f32.mrf.mxu0 }
  0x8d   : > { %v1047_v6 = vadd.f32 %v932_v4, %v370_v5 }
  0x8f   : > { %v1056_v9 = vmul.f32 0.70710677, %v1047_v6 }
  0x91   : > { %v380_v11 = vand.u32 2147483647, %v1056_v9  ;;  %vm446_vm9 = vcmp.lt.f32.partialorder %v1056_v9, 0.0 }
  0x93   : > { %v382_v13 = vmul.f32 0.3275911, %v380_v11  ;;  %v434_v34 = vmul.f32 %v380_v11, %v380_v11 }
  0x94   : > { %v373_v15 = vpop.f32.mrf.mxu0 }
  0x95   : > { %v384_v16 = vadd.f32 1.0, %v382_v13  ;;  %v1068_v17 = vadd.f32 %v932_v4, %v373_v15  ;;  %v436_v40 = vsub.f32 0.0, %v434_v34  ;;  %v376_v13 = vmul.f32 0.5, %v1047_v6  ;;  %v564_v6 = vld [vmem:[%s1214_s5] sm:$0xff] }
  0x96   : > { %597 = vmatpush.msra.mxu2 %v564_v6 }
  0x97   : > { %936 = vrcp.f32 %v384_v16  ;;  %v1077_v20 = vmul.f32 0.70710677, %v1068_v17  ;;  %v397_v28 = vand.u32 2147483648, %v384_v16  ;;  %v395_v30 = vand.u32 2147483647, %v384_v16 }
  0x98   : > { %vm391_vm2 = vweird.f32 %v384_v16  ;;  %v438_v49 = vmul.f32 1.442695, %v436_v40 }
  0x99   : > { %v381_v22 = vand.u32 2147483647, %v1077_v20  ;;  %v398_v32 = vor.u32 1.1754944e-38, %v397_v28  ;;  %vm396_vm4 = vcmp.eq.f32.partialorder %v395_v30, 8.507059e+37  ;;  %vm447_vm11 = vcmp.lt.f32.partialorder %v1077_v20, 0.0 }
  0x9b   : > { %v383_v23 = vmul.f32 0.3275911, %v381_v22  ;;  %v435_v51 = vmul.f32 %v381_v22, %v381_v22 }
  0x9d   : > { %v937_v24 = vpop.eup %936  ;;  %v385_v26 = vadd.f32 1.0, %v383_v23  ;;  %v437_v57 = vsub.f32 0.0, %v435_v51 }
  0x9e   : > { %v387_v25 = vmul.f32 %v937_v24, %v384_v16  ;;  %vm392_vm1 = vweird.f32 %v937_v24 }
  0x9f   : > { %938 = vrcp.f32 %v385_v26  ;;  %vm393_vm3 = vmor %vm391_vm2, %vm392_vm1  ;;  %v412_v41 = vand.u32 2147483648, %v385_v26  ;;  %vm406_vm5 = vweird.f32 %v385_v26  ;;  %v410_v44 = vand.u32 2147483647, %v385_v26 }
  0xa0   : > { %v388_v27 = vsub.f32 1.0, %v387_v25  ;;  %940 = vpow2.f32 %v438_v49  ;;  %v440_v62 = vmul.f32 1.442695, %v437_v57 }
  0xa1   : > { %v413_v47 = vor.u32 1.1754944e-38, %v412_v41  ;;  %vm411_vm8 = vcmp.eq.f32.partialorder %v410_v44, 8.507059e+37 }
  0xa2   : > { %v389_v29 = vmul.f32 %v937_v24, %v388_v27  ;;  %942 = vpow2.f32 %v440_v62 }
  0xa4   : > { %v390_v31 = vadd.f32 %v937_v24, %v389_v29 }
  0xa5   : > { %v939_v33 = vpop.eup %938 }
  0xa6   : > { %v394_v35 = vsel %vm393_vm3, %v937_v24, %v390_v31  ;;  %v402_v36 = vmul.f32 %v939_v33, %v385_v26  ;;  %vm407_vm6 = vweird.f32 %v939_v33  ;;  %v941_v0 = vpop.eup %940  ;;  %v377_v24 = vmul.f32 0.5, %v1068_v17  ;;  %v933_v26 = vld [vmem:[%s1213_s4] ss:$0 sm:$0xff] }
  0xa7   : > { %v399_v37 = vsel %vm396_vm4, %v398_v32, %v394_v35  ;;  %vm408_vm7 = vmor %vm406_vm5, %vm407_vm6 }
  0xa8   : > { %v416_v38 = vmul.f32 1.0614054, %v399_v37  ;;  %v403_v39 = vsub.f32 1.0, %v402_v36  ;;  %v943_v16 = vpop.eup %942 }
  0xaa   : > { %v418_v42 = vadd.f32 -1.4531521, %v416_v38  ;;  %v404_v43 = vmul.f32 %v939_v33, %v403_v39 }
  0xac   : > { %v420_v45 = vmul.f32 %v418_v42, %v399_v37  ;;  %v405_v46 = vadd.f32 %v939_v33, %v404_v43  ;;  %v778_v43 = vld [vmem:[%s1216_s7 + $0x38] sm:$0xff] }
  0xad   : > { %803 = vmatpush.msrb.mxu0 %v778_v43  ;;  %915 = vmatpush.msra.mxu3 %v778_v43 }
  0xae   : > { %v422_v48 = vadd.f32 1.4214138, %v420_v45  ;;  %v409_v50 = vsel %vm408_vm7, %v939_v33, %v405_v46  ;;  %v777_v45 = vld [vmem:[%s1216_s7 + $0x30] sm:$0xff] }
  0xaf   : > { %v414_v53 = vsel %vm411_vm8, %v413_v47, %v409_v50  ;;  %804 = vmatpush.msrb.mxu0 %v777_v45  ;;  %916 = vmatpush.msra.mxu3 %v777_v45 }
  0xb0   : > { %v424_v52 = vmul.f32 %v422_v48, %v399_v37  ;;  %v417_v54 = vmul.f32 1.0614054, %v414_v53  ;;  %v776_v48 = vld [vmem:[%s1216_s7 + $0x28] sm:$0xff] }
  0xb1   : > { %805 = vmatpush.msrb.mxu0 %v776_v48  ;;  %917 = vmatpush.msra.mxu3 %v776_v48 }
  0xb2   : > { %v426_v55 = vadd.f32 -0.28449672, %v424_v52  ;;  %v419_v56 = vadd.f32 -1.4531521, %v417_v54 }
  0xb4   : > { %v428_v58 = vmul.f32 %v426_v55, %v399_v37  ;;  %v421_v59 = vmul.f32 %v419_v56, %v414_v53  ;;  %v774_v56 = vld [vmem:[%s1216_s7 + $0x18] sm:$0xff] }
  0xb6   : > { %v430_v60 = vadd.f32 0.2548296, %v428_v58  ;;  %v423_v61 = vadd.f32 1.4214138, %v421_v59 }
  0xb8   : > { %v432_v63 = vmul.f32 %v430_v60, %v399_v37  ;;  %v425_v1 = vmul.f32 %v423_v61, %v414_v53  ;;  %v773_v61 = vld [vmem:[%s1216_s7 + $0x10] sm:$0xff] }
  0xba   : > { %v442_v4 = vmul.f32 %v941_v0, %v432_v63  ;;  %v427_v5 = vadd.f32 -0.28449672, %v425_v1  ;;  %v772_v63 = vld [vmem:[%s1216_s7 + $0x8] sm:$0xff] }
  0xbc   : > { %v444_v7 = vsub.f32 1.0, %v442_v4  ;;  %v429_v8 = vmul.f32 %v427_v5, %v414_v53  ;;  %v771_v4 = vld [vmem:[%s1216_s7] sm:$0xff] }
  0xbe   : > { %v448_v10 = vsub.f32 0.0, %v444_v7  ;;  %v431_v11 = vadd.f32 0.2548296, %v429_v8 }
  0xc0   : > { %v450_v12 = vsel %vm446_vm9, %v448_v10, %v444_v7  ;;  %v433_v15 = vmul.f32 %v431_v11, %v414_v53  ;;  %v775_v53 = vld [vmem:[%s1216_s7 + $0x20] sm:$0xff] }
  0xc1   : > { %v452_v14 = vadd.f32 1.0, %v450_v12  ;;  %806 = vmatpush.msrb.mxu0 %v775_v53  ;;  %918 = vmatpush.msra.mxu3 %v775_v53 }
  0xc2   : > { %v443_v19 = vmul.f32 %v943_v16, %v433_v15 }
  0xc3   : > { %v454_v18 = vmul.f32 %v452_v14, %v376_v13  ;;  %807 = vmatpush.msrb.mxu0 %v774_v56  ;;  %919 = vmatpush.msra.mxu3 %v774_v56 }
  0xc4   : > { %v445_v21 = vsub.f32 1.0, %v443_v19 }
  0xc5   : > { %902 = vmatmul.msk.f32.vlgmr.msra.gmra.mxu1 %vm468_vm10, %v454_v18  ;;  %808 = vmatpush.msrb.mxu0 %v773_v61 }
  0xc6   : > { %v449_v22 = vsub.f32 0.0, %v445_v21  ;;  %920 = vmatpush.msra.mxu3 %v773_v61 }
  0xc7   : > { %809 = vmatpush.msrb.mxu0 %v772_v63 }
  0xc8   : > { %v451_v23 = vsel %vm447_vm11, %v449_v22, %v445_v21  ;;  %921 = vmatpush.msra.mxu3 %v772_v63 }
  0xc9   : > { %v453_v9 = vadd.f32 1.0, %v451_v23  ;;  %810 = vmatpush.msrb.mxu0 %v771_v4 }
  0xca   : > { %922 = vmatpush.msra.mxu3 %v771_v4 }
  0xcb   : > { %v455_v25 = vmul.f32 %v453_v9, %v377_v24 }
  0xcd   : > { %903 = vmatmul.msk.f32.gmra.mxu1 %vm468_vm10, %v455_v25 }
 0x142   : > { %v492_v27 = vpop.f32.mrf.mxu1 }
 0x143   : > { %v493_v28 = vadd.f32 %v933_v26, %v492_v27 }
 0x145   : > { %v498_v20 = vadd.f32 %v493_v28, %v1038_v2 }
 0x147   : > { %500 = vxpose.xlu0.b32.start.end [1/1] (short) (narrow) %v498_v20, 16 }
 0x14a   : > { %v495_v29 = vpop.f32.mrf.mxu1 }
 0x14b   : > { %v496_v17 = vadd.f32 %v933_v26, %v495_v29 }
 0x14d   : > { %v499_v30 = vadd.f32 %v496_v17, %v1041_v3  ;;  %v934_v3 = vld [vmem:[%s1215_s6] ss:$0 sm:$0xff] }
 0x157   : > { %532 = vxpose.xlu0.b32.start.end [1/1] (short) (narrow) %v499_v30, 16 }
 0x1eb   : > { %v1097_v31 = vpop.trf.xlu0 }
 0x1ec   : > { %904 = vmatmul.msk.f32.vlgmr.msra.gmra.mxu2 %vm569_vm12, %v1097_v31 }
 0x1f3   : > { %v1101_v32 = vpop.trf.xlu0 }
 0x1f4   : > { %905 = vmatmul.msk.f32.gmra.mxu2 %vm569_vm12, %v1101_v32 }
 0x1fb   : > { %v1105_v33 = vpop.trf.xlu0 }
 0x1fc   : > { %906 = vmatmul.msk.f32.gmra.mxu2 %vm569_vm12, %v1105_v33 }
 0x203   : > { %v1109_v2 = vpop.trf.xlu0 }
 0x204   : > { %907 = vmatmul.msk.f32.gmra.mxu2 %vm569_vm12, %v1109_v2 }
 0x26f   : > { %v599_v34 = vpop.f32.mrf.mxu2 }
 0x270   : > { %v1116_v35 = vadd.f32 %v934_v3, %v599_v34 }
 0x272   : > { %v1119_v36 = vmul.f32 0.70710677, %v1116_v35 }
 0x274   : > { %v619_v37 = vand.u32 2147483647, %v1119_v36 }
 0x276   : > { %v623_v38 = vmul.f32 0.3275911, %v619_v37  ;;  %v727_v12 = vmul.f32 %v619_v37, %v619_v37 }
 0x277   : > { %v602_v39 = vpop.f32.mrf.mxu2 }
 0x278   : > { %v627_v40 = vadd.f32 1.0, %v623_v38  ;;  %v1122_v41 = vadd.f32 %v934_v3, %v602_v39  ;;  %v731_v21 = vsub.f32 0.0, %v727_v12 }
 0x27a   : > { %944 = vrcp.f32 %v627_v40  ;;  %v1125_v42 = vmul.f32 0.70710677, %v1122_v41  ;;  %v642_v57 = vand.u32 2147483648, %v627_v40  ;;  %v640_v60 = vand.u32 2147483647, %v627_v40 }
 0x27b   : > { %vm636_vm14 = vweird.f32 %v627_v40  ;;  %v735_v17 = vmul.f32 1.442695, %v731_v21 }
 0x27c   : > { %v1131_v44 = vand.u32 2147483647, %v1125_v42  ;;  %v643_v5 = vor.u32 1.1754944e-38, %v642_v57  ;;  %vm641_vm0 = vcmp.eq.f32.partialorder %v640_v60, 8.507059e+37 }
 0x27e   : > { %v624_v46 = vmul.f32 0.3275911, %v1131_v44  ;;  %v728_v39 = vmul.f32 %v1131_v44, %v1131_v44 }
 0x27f   : > { %v605_v47 = vpop.f32.mrf.mxu2 }
 0x280   : > { %v945_v49 = vpop.eup %944  ;;  %v1140_v50 = vadd.f32 %v934_v3, %v605_v47  ;;  %v628_v52 = vadd.f32 1.0, %v624_v46 }
 0x281   : > { %v632_v51 = vmul.f32 %v945_v49, %v627_v40  ;;  %vm637_vm13 = vweird.f32 %v945_v49 }
 0x282   : > { %v1146_v54 = vmul.f32 0.70710677, %v1140_v50  ;;  %946 = vrcp.f32 %v628_v52  ;;  %vm638_vm15 = vmor %vm636_vm14, %vm637_vm13  ;;  %v657_v22 = vand.u32 2147483648, %v628_v52  ;;  %v655_v24 = vand.u32 2147483647, %v628_v52 }
 0x283   : > { %v633_v55 = vsub.f32 1.0, %v632_v51  ;;  %vm651_vm2 = vweird.f32 %v628_v52  ;;  %vm751_vm13 = vcmp.lt.f32.partialorder %v1119_v36, 0.0 }
 0x284   : > { %v1152_v58 = vand.u32 2147483647, %v1146_v54  ;;  %v658_v20 = vor.u32 1.1754944e-38, %v657_v22  ;;  %vm656_vm4 = vcmp.eq.f32.partialorder %v655_v24, 8.507059e+37 }
 0x285   : > { %v634_v59 = vmul.f32 %v945_v49, %v633_v55 }
 0x286   : > { %v625_v62 = vmul.f32 0.3275911, %v1152_v58 }
 0x287   : > { %v635_v0 = vadd.f32 %v945_v49, %v634_v59  ;;  %v608_v1 = vpop.f32.mrf.mxu2  ;;  %v729_v59 = vmul.f32 %v1152_v58, %v1152_v58  ;;  %v611_v58 = vmul.f32 0.5, %v1116_v35 }
 0x288   : > { %v629_v7 = vadd.f32 1.0, %v625_v62  ;;  %v1164_v8 = vadd.f32 %v934_v3, %v608_v1  ;;  %v947_v10 = vpop.eup %946 }
 0x289   : > { %v639_v11 = vsel %vm638_vm15, %v945_v49, %v635_v0  ;;  %v647_v14 = vmul.f32 %v947_v10, %v628_v52  ;;  %vm652_vm1 = vweird.f32 %v947_v10  ;;  %v732_v52 = vsub.f32 0.0, %v728_v39 }
 0x28a   : > { %v644_v13 = vsel %vm641_vm0, %v643_v5, %v639_v11  ;;  %948 = vrcp.f32 %v629_v7  ;;  %v1167_v18 = vmul.f32 0.70710677, %v1164_v8  ;;  %vm653_vm3 = vmor %vm651_vm2, %vm652_vm1  ;;  %v670_v40 = vand.u32 2147483647, %v629_v7 }
 0x28b   : > { %v691_v15 = vmul.f32 1.0614054, %v644_v13  ;;  %v648_v16 = vsub.f32 1.0, %v647_v14  ;;  %v672_v43 = vand.u32 2147483648, %v629_v7  ;;  %vm666_vm6 = vweird.f32 %v629_v7 }
 0x28c   : > { %v1170_v9 = vand.u32 2147483647, %v1167_v18  ;;  %vm671_vm8 = vcmp.eq.f32.partialorder %v670_v40, 8.507059e+37  ;;  %v737_v1 = vmul.f32 1.442695, %v732_v52  ;;  %v733_v11 = vsub.f32 0.0, %v729_v59 }
 0x28d   : > { %v695_v19 = vadd.f32 -1.4531521, %v691_v15  ;;  %v649_v23 = vmul.f32 %v947_v10, %v648_v16  ;;  %v673_v53 = vor.u32 1.1754944e-38, %v672_v43  ;;  %vm752_vm0 = vcmp.lt.f32.partialorder %v1125_v42, 0.0 }
 0x28e   : > { %v626_v27 = vmul.f32 0.3275911, %v1170_v9  ;;  %v730_v35 = vmul.f32 %v1170_v9, %v1170_v9  ;;  %vm753_vm1 = vcmp.lt.f32.partialorder %v1146_v54, 0.0  ;;  %vm754_vm2 = vcmp.lt.f32.partialorder %v1167_v18, 0.0 }
 0x28f   : > { %v699_v25 = vmul.f32 %v695_v19, %v644_v13  ;;  %v650_v26 = vadd.f32 %v947_v10, %v649_v23 }
 0x290   : > { %v949_v6 = vpop.eup %948  ;;  %v630_v30 = vadd.f32 1.0, %v626_v27 }
 0x291   : > { %v703_v28 = vadd.f32 1.4214138, %v699_v25  ;;  %v662_v29 = vmul.f32 %v949_v6, %v629_v7  ;;  %v654_v3 = vsel %vm653_vm3, %v947_v10, %v650_v26  ;;  %vm667_vm5 = vweird.f32 %v949_v6 }
 0x292   : > { %v659_v38 = vsel %vm656_vm4, %v658_v20, %v654_v3  ;;  %950 = vrcp.f32 %v630_v30  ;;  %vm668_vm7 = vmor %vm666_vm6, %vm667_vm5  ;;  %v685_v12 = vand.u32 2147483647, %v630_v30  ;;  %v687_v14 = vand.u32 2147483648, %v630_v30 }
 0x293   : > { %v707_v34 = vmul.f32 %v703_v28, %v644_v13  ;;  %v663_v37 = vsub.f32 1.0, %v662_v29  ;;  %v692_v47 = vmul.f32 1.0614054, %v659_v38  ;;  %952 = vpow2.f32 %v735_v17 }
 0x294   : > { %954 = vpow2.f32 %v737_v1  ;;  %vm681_vm11 = vweird.f32 %v630_v30  ;;  %v739_v25 = vmul.f32 1.442695, %v733_v11  ;;  %vm686_vm15 = vcmp.eq.f32.partialorder %v685_v12, 8.507059e+37 }
 0x295   : > { %v711_v45 = vadd.f32 -0.28449672, %v707_v34  ;;  %v664_v46 = vmul.f32 %v949_v6, %v663_v37  ;;  %v696_v51 = vadd.f32 -1.4531521, %v692_v47 }
 0x296   : > { %956 = vpow2.f32 %v739_v25 }
 0x297   : > { %v715_v48 = vmul.f32 %v711_v45, %v644_v13  ;;  %v665_v49 = vadd.f32 %v949_v6, %v664_v46  ;;  %v700_v56 = vmul.f32 %v696_v51, %v659_v38  ;;  %v734_v45 = vsub.f32 0.0, %v730_v35 }
 0x298   : > { %v951_v44 = vpop.eup %950 }
 0x299   : > { %v719_v55 = vadd.f32 0.2548296, %v715_v48  ;;  %v669_v57 = vsel %vm668_vm7, %v949_v6, %v665_v49  ;;  %v677_v62 = vmul.f32 %v951_v44, %v630_v30  ;;  %v704_v63 = vadd.f32 1.4214138, %v700_v56  ;;  %v953_v0 = vpop.eup %952 }
 0x29a   : > { %v674_v60 = vsel %vm671_vm8, %v673_v53, %v669_v57  ;;  %vm682_vm9 = vweird.f32 %v951_v44  ;;  %v688_v6 = vor.u32 1.1754944e-38, %v687_v14  ;;  %v955_v30 = vpop.eup %954  ;;  %v741_v9 = vmul.f32 1.442695, %v734_v45 }
 0x29b   : > { %v723_v61 = vmul.f32 %v719_v55, %v644_v13  ;;  %v693_v4 = vmul.f32 1.0614054, %v674_v60  ;;  %v678_v7 = vsub.f32 1.0, %v677_v62  ;;  %v708_v10 = vmul.f32 %v704_v63, %v659_v38  ;;  %vm683_vm14 = vmor %vm681_vm11, %vm682_vm9 }
 0x29c   : > { %v957_v53 = vpop.eup %956  ;;  %v612_v57 = vmul.f32 0.5, %v1122_v41  ;;  %958 = vpow2.f32 %v741_v9 }
 0x29d   : > { %v743_v5 = vmul.f32 %v953_v0, %v723_v61  ;;  %v697_v15 = vadd.f32 -1.4531521, %v693_v4  ;;  %v679_v19 = vmul.f32 %v951_v44, %v678_v7  ;;  %v712_v21 = vadd.f32 -0.28449672, %v708_v10 }
 0x29f   : > { %v747_v16 = vsub.f32 1.0, %v743_v5  ;;  %v701_v13 = vmul.f32 %v697_v15, %v674_v60  ;;  %v680_v23 = vadd.f32 %v951_v44, %v679_v19  ;;  %v716_v24 = vmul.f32 %v712_v21, %v659_v38 }
 0x2a1   : > { %v755_v22 = vsub.f32 0.0, %v747_v16  ;;  %v705_v26 = vadd.f32 1.4214138, %v701_v13  ;;  %v720_v28 = vadd.f32 0.2548296, %v716_v24  ;;  %v684_v20 = vsel %vm683_vm14, %v951_v44, %v680_v23 }
 0x2a2   : > { %v689_v3 = vsel %vm686_vm15, %v688_v6, %v684_v20  ;;  %v959_v41 = vpop.eup %958 }
 0x2a3   : > { %v759_v27 = vsel %vm751_vm13, %v755_v22, %v747_v16  ;;  %v709_v17 = vmul.f32 %v705_v26, %v674_v60  ;;  %v724_v34 = vmul.f32 %v720_v28, %v659_v38  ;;  %v694_v37 = vmul.f32 1.0614054, %v689_v3 }
 0x2a4   : > { %v763_v29 = vadd.f32 1.0, %v759_v27  ;;  %v614_v16 = vmul.f32 0.5, %v1164_v8 }
 0x2a5   : > { %v713_v40 = vadd.f32 -0.28449672, %v709_v17  ;;  %v744_v36 = vmul.f32 %v955_v30, %v724_v34  ;;  %v698_v43 = vadd.f32 -1.4531521, %v694_v37 }
 0x2a6   : > { %v767_v39 = vmul.f32 %v763_v29, %v611_v58 }
 0x2a7   : > { %v717_v46 = vmul.f32 %v713_v40, %v674_v60  ;;  %v748_v47 = vsub.f32 1.0, %v744_v36  ;;  %v702_v48 = vmul.f32 %v698_v43, %v689_v3 }
 0x2a8   : > { %908 = vmatmul.msk.f32.vlgmr.msrb.gmra.mxu0 %vm468_vm10, %v767_v39 }
 0x2a9   : > { %v721_v49 = vadd.f32 0.2548296, %v717_v46  ;;  %v756_v51 = vsub.f32 0.0, %v748_v47  ;;  %v706_v52 = vadd.f32 1.4214138, %v702_v48 }
 0x2ab   : > { %v725_v38 = vmul.f32 %v721_v49, %v674_v60  ;;  %v760_v55 = vsel %vm752_vm0, %v756_v51, %v748_v47  ;;  %v710_v56 = vmul.f32 %v706_v52, %v689_v3  ;;  %v613_v60 = vmul.f32 0.5, %v1140_v50  ;;  %v935_v50 = vld [vmem:[%s1217_s8] ss:$0 sm:$0xff] }
 0x2ac   : > { %v764_v44 = vadd.f32 1.0, %v760_v55 }
 0x2ad   : > { %v745_v59 = vmul.f32 %v957_v53, %v725_v38  ;;  %v714_v61 = vadd.f32 -0.28449672, %v710_v56 }
 0x2ae   : > { %v768_v62 = vmul.f32 %v764_v44, %v612_v57 }
 0x2af   : > { %v749_v63 = vsub.f32 1.0, %v745_v59  ;;  %v718_v0 = vmul.f32 %v714_v61, %v689_v3 }
 0x2b0   : > { %909 = vmatmul.msk.f32.vlgmr.msra.gmra.mxu3 %vm468_vm10, %v768_v62 }
 0x2b1   : > { %v757_v1 = vsub.f32 0.0, %v749_v63  ;;  %v722_v42 = vadd.f32 0.2548296, %v718_v0 }
 0x2b3   : > { %v761_v4 = vsel %vm753_vm1, %v757_v1, %v749_v63  ;;  %v726_v7 = vmul.f32 %v722_v42, %v689_v3 }
 0x2b4   : > { %v765_v5 = vadd.f32 1.0, %v761_v4 }
 0x2b5   : > { %v746_v11 = vmul.f32 %v959_v41, %v726_v7 }
 0x2b6   : > { %v769_v10 = vmul.f32 %v765_v5, %v613_v60 }
 0x2b7   : > { %v750_v12 = vsub.f32 1.0, %v746_v11 }
 0x2b8   : > { %910 = vmatmul.msk.f32.gmra.mxu3 %vm468_vm10, %v769_v10 }
 0x2b9   : > { %v758_v14 = vsub.f32 0.0, %v750_v12 }
 0x2bb   : > { %v762_v15 = vsel %vm754_vm2, %v758_v14, %v750_v12 }
 0x2bc   : > { %v766_v54 = vadd.f32 1.0, %v762_v15 }
 0x2be   : > { %v770_v19 = vmul.f32 %v766_v54, %v614_v16 }
 0x2c0   : > { %911 = vmatmul.msk.f32.gmra.mxu3 %vm468_vm10, %v770_v19 }
 0x325   : > { %v812_v21 = vpop.f32.mrf.mxu0 }
 0x326   : > { %v813_v58 = vadd.f32 %v935_v50, %v812_v21 }
 0x328   : > { %v824_v18 = vadd.f32 %v813_v58, %v1097_v31 }
 0x32a   : > { %828 = vst.msk [vmem:[%s336_s27] sm:$0xff] %vm569_vm12, %v824_v18 }
 0x333   : > { %v815_v8 = vpop.f32.mrf.mxu3 }
 0x334   : > { %v816_v13 = vadd.f32 %v935_v50, %v815_v8 }
 0x336   : > { %v825_v22 = vadd.f32 %v816_v13, %v1101_v32 }
 0x338   : > { %829 = vst.msk [vmem:[%s336_s27 + $0x8] sm:$0xff] %vm569_vm12, %v825_v22 }
 0x33b   : > { %v818_v23 = vpop.f32.mrf.mxu3 }
 0x33c   : > { %v819_v24 = vadd.f32 %v935_v50, %v818_v23 }
 0x33e   : > { %v826_v25 = vadd.f32 %v819_v24, %v1105_v33 }
 0x340   : > { %830 = vst.msk [vmem:[%s336_s27 + $0x10] sm:$0xff] %vm569_vm12, %v826_v25 }
 0x343   : > { %v821_v6 = vpop.f32.mrf.mxu3 }
 0x344   : > { %v822_v26 = vadd.f32 %v935_v50, %v821_v6 }
 0x346   : > { %v827_v27 = vadd.f32 %v822_v26, %v1109_v2 }
 0x348   : > { %831 = vst.msk [vmem:[%s336_s27 + $0x18] sm:$0xff] %vm569_vm12, %v827_v27 }
 0x349 PF: > { %s19_s30 = sadd.s32 1, %s966_s30  }
 0x34a   : > { %p16_p4 = scmp.ge.s32.totalorder %s19_s30, 4  }
 0x34c   :  { %18 = sbr.rel (!%p16_p4) target bundleno = 1 (0x1), region = 86 }

</bundles_post_ra>
